<compile_context>
chip_gen: v7x
topology: tpu7x:2x2x1
jax: 0.10.0
libtpu: 0.0.40
codegen_flags: <defaults>
</compile_context>

<pallas_src>
import functools
import math

import jax
import jax.numpy as jnp
from jax.experimental import pallas as pl
from jax.experimental.pallas import tpu as pltpu

LN_EPS = 1e-5
IGNORE = -100000.0
COMPUTE_DTYPE = jnp.bfloat16        # MXU input dtype; accumulation stays f32
LOGITS_DTYPE = jnp.bfloat16         # reduced-precision logits writeback


# ----------------------------- in-kernel helpers -----------------------------

def _layernorm(x, w, b):
    mu = jnp.mean(x, axis=-1, keepdims=True)
    xc = x - mu
    var = jnp.mean(xc * xc, axis=-1, keepdims=True)
    return xc * jax.lax.rsqrt(var + LN_EPS) * w + b


def _gelu_new(x):
    # GPT-2 "new" gelu: 0.5*x*(1+tanh(sqrt(2/pi)*(x+0.044715*x^3)))
    return 0.5 * x * (1.0 + jnp.tanh(
        jnp.sqrt(2.0 / jnp.pi) * (x + 0.044715 * x * x * x)))


# --------------------------- VMEM / spec utilities ----------------------------

@functools.lru_cache(maxsize=None)
def _vmem_limit_bytes():
    cap = 64 * 1024 * 1024                      # conservative fallback (v7x-sized)
    try:
        info = pltpu.get_tpu_info()
        cap = int(getattr(info, "vmem_capacity_bytes", cap))
    except Exception:
        pass
    # ~81% of physical: ~52 MiB on v7x (64 MiB), ~104 MiB on v5e/v6e (128 MiB).
    return (cap // 16) * 13


def _wspec(shape, single_buffer):
    """Full-array BlockSpec for a grid-invariant weight/bias."""
    n = len(shape)
    imap = lambda *_, _n=n: (0,) * _n
    if single_buffer:
        return pl.BlockSpec(shape, imap, pipeline_mode=pl.Buffered(1))
    return pl.BlockSpec(shape, imap)


_SINGLE_BUFFER_WEIGHTS = [True]


def _run_with_buffering_fallback(build_and_call):
    """Try single-buffered weights; fall back once if pl.Buffered(1) is rejected."""
    if _SINGLE_BUFFER_WEIGHTS[0]:
        try:
            return build_and_call(True)
        except Exception:
            _SINGLE_BUFFER_WEIGHTS[0] = False
    return build_and_call(False)


def _pick_seq_tile(S):
    if S <= 512:
        return S
    for ts in (512, 256, 128, 64):
        if S % ts == 0:
            return ts
    return S


# ------------------------------ Pallas kernels -------------------------------

def transformer_block_kernel(resid_ref, ln1w_ref, ln1b_ref,
                             wq_ref, bq_ref, wkv_ref, bkv_ref,
                             wo_ref, bo_ref, ln2w_ref, ln2b_ref,
                             win_ref, bin_ref, wout_ref, bout_ref,
                             out_ref, *, n_heads, d_head, s_tiles):
    x_full = resid_ref[0]                         # (S, D) float32, full sequence
    S, D = x_full.shape
    HD = n_heads * d_head
    TS = out_ref.shape[1]                         # query-tile length

    # --- LN1 over the full sequence (needed for K/V) ---
    nx_full_c = _layernorm(x_full, ln1w_ref[...], ln1b_ref[...]).astype(COMPUTE_DTYPE)

    if s_tiles == 1:                              # static branch (toy/demo shapes)
        q0 = 0
        x_q = x_full
        nx_q_c = nx_full_c
    else:
        q0 = pl.multiple_of(pl.program_id(1) * TS, TS)
        x_q = resid_ref[0, pl.ds(q0, TS), :]      # query-tile rows of the residual
        nx_q_c = _layernorm(x_q, ln1w_ref[...], ln1b_ref[...]).astype(COMPUTE_DTYPE)

    # --- projections: Q for the tile, fused K|V for the full sequence ---
    scale = 1.0 / math.sqrt(d_head)
    q_all = (jnp.dot(nx_q_c, wq_ref[...], preferred_element_type=jnp.float32)
             + bq_ref[...]) * scale                                # (TS, HD)
    kv_all = (jnp.dot(nx_full_c, wkv_ref[...], preferred_element_type=jnp.float32)
              + bkv_ref[...])                                      # (S, 2*HD)
    k_all = kv_all[:, :HD]
    v_all = kv_all[:, HD:]

    # --- causal additive bias, built once and shared by all heads ---
    row = jax.lax.broadcasted_iota(jnp.int32, (TS, S), 0) + q0     # global query pos
    col = jax.lax.broadcasted_iota(jnp.int32, (TS, S), 1)          # key pos
    causal_bias = jnp.where(col > row, IGNORE, 0.0)

    # --- per-head scores / softmax / PV (small static loop) ---
    # TODO(synk): a head-batched einsum would remove the d_head-boundary lane
    # slices/concat, but needs non-leading-batch dot_general / major<->sublane
    # transposes that Mosaic does not lower today; keep the proven 2-D path.
    z_parts = []
    for h in range(n_heads):
        lo = h * d_head
        qh = q_all[:, lo:lo + d_head]
        kh = k_all[:, lo:lo + d_head]
        vh = v_all[:, lo:lo + d_head]
        s = jnp.dot(qh, kh.T, preferred_element_type=jnp.float32) + causal_bias
        s = s - jnp.max(s, axis=-1, keepdims=True)
        p = jnp.exp(s)
        p = p * pl.reciprocal(jnp.sum(p, axis=-1, keepdims=True), approx=True)
        z_parts.append(jnp.dot(p, vh, preferred_element_type=jnp.float32))
    z_all = jnp.concatenate(z_parts, axis=-1)                      # (TS, HD)

    # --- fused output projection ---
    attn_out = jnp.dot(z_all.astype(COMPUTE_DTYPE), wo_ref[...],
                       preferred_element_type=jnp.float32) + bo_ref[...]
    resid_mid = x_q + attn_out

    # --- LN2 + MLP (gelu in f32, immediate bf16 cast to shrink live ranges) ---
    nmid_c = _layernorm(resid_mid, ln2w_ref[...], ln2b_ref[...]).astype(COMPUTE_DTYPE)
    pre = jnp.dot(nmid_c, win_ref[...], preferred_element_type=jnp.float32) + bin_ref[...]
    post_c = _gelu_new(pre).astype(COMPUTE_DTYPE)
    mlp_out = jnp.dot(post_c, wout_ref[...], preferred_element_type=jnp.float32) + bout_ref[...]

    out_ref[0] = resid_mid + mlp_out


def final_ln_unembed_kernel(resid_ref, lnw_ref, lnb_ref, wu_ref, bu_ref,
                            logits_ref, nx_ref):
    # grid = (B, V // TV); vocab axis innermost, so the LayerNorm of each batch
    # row is computed once (first vocab tile) into a bf16 VMEM scratch.
    @pl.when(pl.program_id(1) == 0)
    def _():
        nx_ref[...] = _layernorm(resid_ref[0], lnw_ref[...],
                                 lnb_ref[...]).astype(nx_ref.dtype)

    acc = jnp.dot(nx_ref[...], wu_ref[...], preferred_element_type=jnp.float32)
    logits_ref[0] = (acc + bu_ref[...]).astype(logits_ref.dtype)


# ------------------------------- wrappers ------------------------------------

def run_block(residual, layer, n_heads, d_head):
    B, S, D = residual.shape
    HD = n_heads * d_head
    d_mlp = layer["w_in"].shape[1]
    ts = _pick_seq_tile(S)
    s_tiles = S // ts
    vmem_limit = _vmem_limit_bytes()
    kernel = functools.partial(transformer_block_kernel,
                               n_heads=n_heads, d_head=d_head, s_tiles=s_tiles)

    def build_and_call(single_buffer):
        ws = lambda shape: _wspec(shape, single_buffer)
        in_specs = [
            pl.BlockSpec((1, S, D), lambda b, qi: (b, 0, 0)),   # full residual row
            ws((1, D)), ws((1, D)),                             # ln1 w, b
            ws((D, HD)), ws((1, HD)),                           # W_Q fused, b_Q
            ws((D, 2 * HD)), ws((1, 2 * HD)),                   # W_K|W_V fused, b_K|b_V
            ws((HD, D)), ws((1, D)),                            # W_O fused, b_O
            ws((1, D)), ws((1, D)),                             # ln2 w, b
            ws((D, d_mlp)), ws((1, d_mlp)),                     # W_in, b_in
            ws((d_mlp, D)), ws((1, D)),                         # W_out, b_out
        ]
        # In-place residual update is only hazard-free when each grid step owns
        # its full (1, S, D) row (i.e. a single sequence tile).
        aliases = {0: 0} if s_tiles == 1 else {}
        return pl.pallas_call(
            kernel,
            out_shape=jax.ShapeDtypeStruct((B, S, D), jnp.float32),
            grid=(B, s_tiles),
            in_specs=in_specs,
            out_specs=pl.BlockSpec((1, ts, D), lambda b, qi: (b, qi, 0)),
            input_output_aliases=aliases,
            compiler_params=pltpu.CompilerParams(
                dimension_semantics=("parallel", "parallel"),
                vmem_limit_bytes=vmem_limit),
        )(residual,
          layer["ln1_w"], layer["ln1_b"],
          layer["w_q"], layer["b_q"],
          layer["w_kv"], layer["b_kv"],
          layer["w_o"], layer["b_o"],
          layer["ln2_w"], layer["ln2_b"],
          layer["w_in"], layer["b_in"],
          layer["w_out"], layer["b_out"])

    return _run_with_buffering_fallback(build_and_call)


def run_final(residual, lnw, lnb, wu, bu, *, logits_dtype=LOGITS_DTYPE):
    B, S, D = residual.shape
    V = wu.shape[1]
    vmem_limit = _vmem_limit_bytes()
    tv_max = 4096 if vmem_limit > (72 << 20) else 2048   # bigger tiles on 128 MiB parts
    tv = V if V <= tv_max else tv_max
    v_pad = -(-V // tv) * tv
    if v_pad != V:
        wu = jnp.pad(wu, ((0, 0), (0, v_pad - V)))
        bu = jnp.pad(bu, ((0, 0), (0, v_pad - V)))

    logits = pl.pallas_call(
        final_ln_unembed_kernel,
        out_shape=jax.ShapeDtypeStruct((B, S, v_pad), logits_dtype),
        grid=(B, v_pad // tv),
        in_specs=[
            pl.BlockSpec((1, S, D), lambda b, j: (b, 0, 0)),
            pl.BlockSpec((1, D), lambda b, j: (0, 0)),
            pl.BlockSpec((1, D), lambda b, j: (0, 0)),
            pl.BlockSpec((D, tv), lambda b, j: (0, j)),          # W_U vocab tile
            pl.BlockSpec((1, tv), lambda b, j: (0, j)),          # b_U vocab tile
        ],
        out_specs=pl.BlockSpec((1, S, tv), lambda b, j: (b, 0, j)),
        scratch_shapes=[pltpu.VMEM((S, D), COMPUTE_DTYPE)],
        compiler_params=pltpu.CompilerParams(
            dimension_semantics=("parallel", "arbitrary"),
            vmem_limit_bytes=vmem_limit),
    )(residual, lnw, lnb, wu, bu)
    return logits[..., :V] if v_pad != V else logits


def pack_params(params, n_heads, d_head):
    """One-time weight packing: head fusion + bf16 cast, hoisted out of forward."""
    D = params["W_E"].shape[1]
    HD = n_heads * d_head
    packed = {
        "W_E": params["W_E"],
        "W_pos": params["W_pos"],
        "ln_final_w": params["ln_final_w"],
        "ln_final_b": params["ln_final_b"],
        "W_U": params["W_U"].astype(COMPUTE_DTYPE),
        "b_U": params["b_U"],
        "blocks": [],
    }
    for layer in params["blocks"]:
        wq = jnp.transpose(layer["W_Q"], (1, 0, 2)).reshape(D, HD)
        wk = jnp.transpose(layer["W_K"], (1, 0, 2)).reshape(D, HD)
        wv = jnp.transpose(layer["W_V"], (1, 0, 2)).reshape(D, HD)
        packed["blocks"].append({
            "ln1_w": layer["ln1_w"], "ln1_b": layer["ln1_b"],
            "w_q": wq.astype(COMPUTE_DTYPE),
            "b_q": layer["b_Q"].reshape(1, HD),
            "w_kv": jnp.concatenate([wk, wv], axis=1).astype(COMPUTE_DTYPE),
            "b_kv": jnp.concatenate([layer["b_K"].reshape(1, HD),
                                     layer["b_V"].reshape(1, HD)], axis=1),
            "w_o": layer["W_O"].reshape(HD, D).astype(COMPUTE_DTYPE),
            "b_o": layer["b_O"],
            "ln2_w": layer["ln2_w"], "ln2_b": layer["ln2_b"],
            "w_in": layer["W_in"].astype(COMPUTE_DTYPE), "b_in": layer["b_in"],
            "w_out": layer["W_out"].astype(COMPUTE_DTYPE), "b_out": layer["b_out"],
        })
    return packed


def demo_transformer_forward(tokens, packed, n_heads, d_head):
    # TODO(synk): token-embedding gather (data-dependent) stays in plain JAX.
    S = tokens.shape[1]
    embed = packed["W_E"][tokens]                       # (B, S, D)
    residual = embed + packed["W_pos"][:S][None, :, :]
    for layer in packed["blocks"]:
        residual = run_block(residual, layer, n_heads, d_head)
    return run_final(residual, packed["ln_final_w"], packed["ln_final_b"],
                     packed["W_U"], packed["b_U"])


# --------------------------- pure-JAX reference -------------------------------
# Uses the ORIGINAL (unpacked) per-head parameters and mirrors the kernel's
# mixed precision (bf16 matmul inputs, f32 accumulation).

def reference_forward(tokens, params, n_heads, d_head):
    S = tokens.shape[1]
    cd = COMPUTE_DTYPE
    f32 = jnp.float32
    x = params["W_E"][tokens] + params["W_pos"][:S][None]
    for layer in params["blocks"]:
        nx = _layernorm(x, layer["ln1_w"], layer["ln1_b"]).astype(cd)
        q = jnp.einsum("bsd,hde->bshe", nx, layer["W_Q"].astype(cd),
                       preferred_element_type=f32) + layer["b_Q"]
        k = jnp.einsum("bsd,hde->bshe", nx, layer["W_K"].astype(cd),
                       preferred_element_type=f32) + layer["b_K"]
        v = jnp.einsum("bsd,hde->bshe", nx, layer["W_V"].astype(cd),
                       preferred_element_type=f32) + layer["b_V"]
        scores = jnp.einsum("bqhe,bkhe->bhqk", q, k) / math.sqrt(d_head)
        mask = jnp.triu(jnp.ones((S, S), bool), k=1)
        scores = jnp.where(mask, IGNORE, scores)
        pattern = jax.nn.softmax(scores, axis=-1)
        z = jnp.einsum("bhqk,bkhe->bqhe", pattern, v)
        attn_out = jnp.einsum("bqhe,hed->bqd", z.astype(cd),
                              layer["W_O"].astype(cd),
                              preferred_element_type=f32) + layer["b_O"]
        x = x + attn_out
        nmid = _layernorm(x, layer["ln2_w"], layer["ln2_b"]).astype(cd)
        pre = jnp.einsum("bsm,md->bsd", nmid.astype(cd), layer["W_in"].astype(cd),
                         preferred_element_type=f32) + layer["b_in"]
        post = _gelu_new(pre).astype(cd)
        mlp_out = jnp.einsum("bsm,md->bsd", post, layer["W_out"].astype(cd),
                             preferred_element_type=f32) + layer["b_out"]
        x = x + mlp_out
    nf = _layernorm(x, params["ln_final_w"], params["ln_final_b"]).astype(cd)
    return jnp.einsum("bsd,dv->bsv", nf, params["W_U"].astype(cd),
                      preferred_element_type=f32) + params["b_U"]


# --------------------------------- main ---------------------------------------

def make_params(key, *, d_model, n_heads, d_head, d_mlp, d_vocab, n_ctx, n_layers,
                init_range=0.02):
    keys = iter(jax.random.split(key, 8 + 8 * n_layers))
    nrm = lambda shape: (init_range * jax.random.normal(next(keys), shape)).astype(jnp.float32)
    params = {
        "W_E": nrm((d_vocab, d_model)),
        "W_pos": nrm((n_ctx, d_model)),
        "ln_final_w": jnp.ones((1, d_model), jnp.float32),
        "ln_final_b": jnp.zeros((1, d_model), jnp.float32),
        "W_U": nrm((d_model, d_vocab)),
        "b_U": jnp.zeros((1, d_vocab), jnp.float32),
        "blocks": [],
    }
    for _ in range(n_layers):
        params["blocks"].append({
            "ln1_w": jnp.ones((1, d_model), jnp.float32),
            "ln1_b": jnp.zeros((1, d_model), jnp.float32),
            "W_Q": nrm((n_heads, d_model, d_head)),
            "b_Q": jnp.zeros((n_heads, d_head), jnp.float32),
            "W_K": nrm((n_heads, d_model, d_head)),
            "b_K": jnp.zeros((n_heads, d_head), jnp.float32),
            "W_V": nrm((n_heads, d_model, d_head)),
            "b_V": jnp.zeros((n_heads, d_head), jnp.float32),
            "W_O": nrm((n_heads, d_head, d_model)),
            "b_O": jnp.zeros((1, d_model), jnp.float32),
            "ln2_w": jnp.ones((1, d_model), jnp.float32),
            "ln2_b": jnp.zeros((1, d_model), jnp.float32),
            "W_in": nrm((d_model, d_mlp)),
            "b_in": jnp.zeros((1, d_mlp), jnp.float32),
            "W_out": nrm((d_mlp, d_model)),
            "b_out": jnp.zeros((1, d_model), jnp.float32),
        })
    return params


if __name__ == "__main__":
    # Small config consistent with the module (scaled-down GPT-2 shapes).
    B, S = 2, 8
    d_model, n_heads, d_head = 32, 4, 8
    d_mlp, d_vocab, n_ctx, n_layers = 128, 128, 16, 2

    key = jax.random.PRNGKey(0)
    pkey, tkey = jax.random.split(key)
    params = make_params(pkey, d_model=d_model, n_heads=n_heads, d_head=d_head,
                         d_mlp=d_mlp, d_vocab=d_vocab, n_ctx=n_ctx, n_layers=n_layers)
    tokens = jax.random.randint(tkey, (B, S), 0, d_vocab, dtype=jnp.int32)

    packed = pack_params(params, n_heads, d_head)       # one-time weight packing
    logits = demo_transformer_forward(tokens, packed, n_heads, d_head)
    logits = jax.block_until_ready(logits)

    ref = reference_forward(tokens, params, n_heads, d_head)
    assert logits.shape == (B, S, d_vocab)
    ref_q = ref.astype(LOGITS_DTYPE).astype(jnp.float32)
    assert jnp.allclose(logits.astype(jnp.float32), ref_q,
                        rtol=5e-3, atol=5e-3), "mismatch vs reference"

    print("KERNEL_OK")
</pallas_src>

<mosaic_0001>
module attributes {stable_mosaic.version = 11 : i64} {
  func.func @transformer_block_kernel(%arg0: i32, %arg1: i32, %arg2: memref<1x8x32xf32, #tpu.memory_space<vmem>>, %arg3: memref<1x32xf32, #tpu.memory_space<vmem>>, %arg4: memref<1x32xf32, #tpu.memory_space<vmem>>, %arg5: memref<32x32xbf16, #tpu.memory_space<vmem>>, %arg6: memref<1x32xf32, #tpu.memory_space<vmem>>, %arg7: memref<32x64xbf16, #tpu.memory_space<vmem>>, %arg8: memref<1x64xf32, #tpu.memory_space<vmem>>, %arg9: memref<32x32xbf16, #tpu.memory_space<vmem>>, %arg10: memref<1x32xf32, #tpu.memory_space<vmem>>, %arg11: memref<1x32xf32, #tpu.memory_space<vmem>>, %arg12: memref<1x32xf32, #tpu.memory_space<vmem>>, %arg13: memref<32x128xbf16, #tpu.memory_space<vmem>>, %arg14: memref<1x128xf32, #tpu.memory_space<vmem>>, %arg15: memref<128x32xbf16, #tpu.memory_space<vmem>>, %arg16: memref<1x32xf32, #tpu.memory_space<vmem>>, %arg17: memref<1x8x32xf32, #tpu.memory_space<vmem>>) attributes {dimension_semantics = [#tpu.dimension_semantics<parallel>, #tpu.dimension_semantics<parallel>], iteration_bounds = array<i64: 2, 1>, scalar_prefetch = 0 : i64, scratch_operands = 0 : i64, tpu.core_type = #tpu.core_type<tc>, window_params = [{transform_indices = @transform_0, window_bounds = array<i64: 1, 8, 32>}, {pipeline_mode = #tpu.pipeline_mode<synchronous>, transform_indices = @transform_1, window_bounds = array<i64: 1, 32>}, {pipeline_mode = #tpu.pipeline_mode<synchronous>, transform_indices = @transform_2, window_bounds = array<i64: 1, 32>}, {pipeline_mode = #tpu.pipeline_mode<synchronous>, transform_indices = @transform_3, window_bounds = array<i64: 32, 32>}, {pipeline_mode = #tpu.pipeline_mode<synchronous>, transform_indices = @transform_4, window_bounds = array<i64: 1, 32>}, {pipeline_mode = #tpu.pipeline_mode<synchronous>, transform_indices = @transform_5, window_bounds = array<i64: 32, 64>}, {pipeline_mode = #tpu.pipeline_mode<synchronous>, transform_indices = @transform_6, window_bounds = array<i64: 1, 64>}, {pipeline_mode = #tpu.pipeline_mode<synchronous>, transform_indices = @transform_7, window_bounds = array<i64: 32, 32>}, {pipeline_mode = #tpu.pipeline_mode<synchronous>, transform_indices = @transform_8, window_bounds = array<i64: 1, 32>}, {pipeline_mode = #tpu.pipeline_mode<synchronous>, transform_indices = @transform_9, window_bounds = array<i64: 1, 32>}, {pipeline_mode = #tpu.pipeline_mode<synchronous>, transform_indices = @transform_10, window_bounds = array<i64: 1, 32>}, {pipeline_mode = #tpu.pipeline_mode<synchronous>, transform_indices = @transform_11, window_bounds = array<i64: 32, 128>}, {pipeline_mode = #tpu.pipeline_mode<synchronous>, transform_indices = @transform_12, window_bounds = array<i64: 1, 128>}, {pipeline_mode = #tpu.pipeline_mode<synchronous>, transform_indices = @transform_13, window_bounds = array<i64: 128, 32>}, {pipeline_mode = #tpu.pipeline_mode<synchronous>, transform_indices = @transform_14, window_bounds = array<i64: 1, 32>}, {transform_indices = @transform_15, window_bounds = array<i64: 1, 8, 32>}]} {
    %c0 = arith.constant 0 : index
    %c0_0 = arith.constant 0 : index
    %c0_1 = arith.constant 0 : index
    %0 = vector.load %arg2[%c0, %c0_0, %c0_1] : memref<1x8x32xf32, #tpu.memory_space<vmem>>, vector<1x8x32xf32>
    %1 = vector.shape_cast %0 : vector<1x8x32xf32> to vector<8x32xf32>
    %c0_2 = arith.constant 0 : index
    %c0_3 = arith.constant 0 : index
    %2 = vector.load %arg3[%c0_2, %c0_3] : memref<1x32xf32, #tpu.memory_space<vmem>>, vector<1x32xf32>
    %c0_4 = arith.constant 0 : index
    %c0_5 = arith.constant 0 : index
    %3 = vector.load %arg4[%c0_4, %c0_5] : memref<1x32xf32, #tpu.memory_space<vmem>>, vector<1x32xf32>
    %cst = arith.constant dense<0.000000e+00> : vector<8xf32>
    %4 = vector.multi_reduction <add>, %1, %cst [1] : vector<8x32xf32> to vector<8xf32>
    %5 = vector.shape_cast %4 : vector<8xf32> to vector<8x1xf32>
    %cst_6 = arith.constant 3.200000e+01 : f32
    %6 = vector.broadcast %cst_6 : f32 to vector<8x1xf32>
    %7 = arith.divf %5, %6 : vector<8x1xf32>
    %8 = vector.broadcast %7 : vector<8x1xf32> to vector<8x32xf32>
    %9 = arith.subf %1, %8 : vector<8x32xf32>
    %10 = arith.mulf %9, %9 : vector<8x32xf32>
    %cst_7 = arith.constant dense<0.000000e+00> : vector<8xf32>
    %11 = vector.multi_reduction <add>, %10, %cst_7 [1] : vector<8x32xf32> to vector<8xf32>
    %12 = vector.shape_cast %11 : vector<8xf32> to vector<8x1xf32>
    %cst_8 = arith.constant 3.200000e+01 : f32
    %13 = vector.broadcast %cst_8 : f32 to vector<8x1xf32>
    %14 = arith.divf %12, %13 : vector<8x1xf32>
    %cst_9 = arith.constant 9.99999974E-6 : f32
    %15 = vector.broadcast %cst_9 : f32 to vector<8x1xf32>
    %16 = arith.addf %14, %15 : vector<8x1xf32>
    %17 = math.rsqrt %16 : vector<8x1xf32>
    %18 = vector.broadcast %17 : vector<8x1xf32> to vector<8x32xf32>
    %19 = arith.mulf %9, %18 : vector<8x32xf32>
    %20 = vector.broadcast %2 : vector<1x32xf32> to vector<8x32xf32>
    %21 = arith.mulf %19, %20 : vector<8x32xf32>
    %22 = vector.broadcast %3 : vector<1x32xf32> to vector<8x32xf32>
    %23 = arith.addf %21, %22 : vector<8x32xf32>
    %24 = arith.truncf %23 : vector<8x32xf32> to vector<8x32xbf16>
    %c0_10 = arith.constant 0 : index
    %c0_11 = arith.constant 0 : index
    %25 = vector.load %arg5[%c0_10, %c0_11] : memref<32x32xbf16, #tpu.memory_space<vmem>>, vector<32x32xbf16>
    %cst_12 = arith.constant dense<0.000000e+00> : vector<8x32xf32>
    %26 = tpu.matmul %24, %25, %cst_12 {dimension_numbers = #tpu.dot_dimension_numbers<[1], [0], [0], [1], [0, 0, 1, 1], [], []>} : vector<8x32xbf16>, vector<32x32xbf16>, vector<8x32xf32> -> vector<8x32xf32>
    %c0_13 = arith.constant 0 : index
    %c0_14 = arith.constant 0 : index
    %27 = vector.load %arg6[%c0_13, %c0_14] : memref<1x32xf32, #tpu.memory_space<vmem>>, vector<1x32xf32>
    %28 = vector.broadcast %27 : vector<1x32xf32> to vector<8x32xf32>
    %29 = arith.addf %26, %28 : vector<8x32xf32>
    %cst_15 = arith.constant 0.353553385 : f32
    %30 = vector.broadcast %cst_15 : f32 to vector<8x32xf32>
    %31 = arith.mulf %29, %30 : vector<8x32xf32>
    %c0_16 = arith.constant 0 : index
    %c0_17 = arith.constant 0 : index
    %32 = vector.load %arg7[%c0_16, %c0_17] : memref<32x64xbf16, #tpu.memory_space<vmem>>, vector<32x64xbf16>
    %cst_18 = arith.constant dense<0.000000e+00> : vector<8x64xf32>
    %33 = tpu.matmul %24, %32, %cst_18 {dimension_numbers = #tpu.dot_dimension_numbers<[1], [0], [0], [1], [0, 0, 1, 1], [], []>} : vector<8x32xbf16>, vector<32x64xbf16>, vector<8x64xf32> -> vector<8x64xf32>
    %c0_19 = arith.constant 0 : index
    %c0_20 = arith.constant 0 : index
    %34 = vector.load %arg8[%c0_19, %c0_20] : memref<1x64xf32, #tpu.memory_space<vmem>>, vector<1x64xf32>
    %35 = vector.broadcast %34 : vector<1x64xf32> to vector<8x64xf32>
    %36 = arith.addf %33, %35 : vector<8x64xf32>
    %37 = vector.extract_strided_slice %36 {offsets = [0, 0], sizes = [8, 32], strides = [1, 1]} : vector<8x64xf32> to vector<8x32xf32>
    %38 = vector.extract_strided_slice %36 {offsets = [0, 32], sizes = [8, 32], strides = [1, 1]} : vector<8x64xf32> to vector<8x32xf32>
    %39 = tpu.iota {dimensions = array<i32: 0>} : vector<8x8xi32>
    %c0_i32 = arith.constant 0 : i32
    %40 = vector.broadcast %c0_i32 : i32 to vector<8x8xi32>
    %41 = arith.addi %39, %40 : vector<8x8xi32>
    %42 = tpu.iota {dimensions = array<i32: 1>} : vector<8x8xi32>
    %43 = arith.cmpi sgt, %42, %41 : vector<8x8xi32>
    %cst_21 = arith.constant -1.000000e+05 : f32
    %cst_22 = arith.constant 0.000000e+00 : f32
    %44 = vector.broadcast %cst_21 : f32 to vector<8x8xf32>
    %45 = vector.broadcast %cst_22 : f32 to vector<8x8xf32>
    %46 = arith.select %43, %44, %45 : vector<8x8xi1>, vector<8x8xf32>
    %47 = vector.extract_strided_slice %31 {offsets = [0, 0], sizes = [8, 8], strides = [1, 1]} : vector<8x32xf32> to vector<8x8xf32>
    %48 = vector.extract_strided_slice %37 {offsets = [0, 0], sizes = [8, 8], strides = [1, 1]} : vector<8x32xf32> to vector<8x8xf32>
    %49 = vector.extract_strided_slice %38 {offsets = [0, 0], sizes = [8, 8], strides = [1, 1]} : vector<8x32xf32> to vector<8x8xf32>
    %50 = tpu.transpose %48, [1, 0] : vector<8x8xf32> -> vector<8x8xf32>
    %cst_23 = arith.constant dense<0.000000e+00> : vector<8x8xf32>
    %51 = tpu.matmul %47, %50, %cst_23 {dimension_numbers = #tpu.dot_dimension_numbers<[1], [0], [0], [1], [0, 0, 1, 1], [], []>} : vector<8x8xf32>, vector<8x8xf32>, vector<8x8xf32> -> vector<8x8xf32>
    %52 = arith.addf %51, %46 : vector<8x8xf32>
    %cst_24 = arith.constant dense<0xFF800000> : vector<8xf32>
    %53 = vector.multi_reduction <maximumf>, %52, %cst_24 [1] : vector<8x8xf32> to vector<8xf32>
    %54 = vector.shape_cast %53 : vector<8xf32> to vector<8x1xf32>
    %55 = vector.broadcast %54 : vector<8x1xf32> to vector<8x8xf32>
    %56 = arith.subf %52, %55 : vector<8x8xf32>
    %57 = math.exp %56 : vector<8x8xf32>
    %cst_25 = arith.constant dense<0.000000e+00> : vector<8xf32>
    %58 = vector.multi_reduction <add>, %57, %cst_25 [1] : vector<8x8xf32> to vector<8xf32>
    %59 = vector.shape_cast %58 : vector<8xf32> to vector<8x1xf32>
    %60 = tpu.reciprocal %59 {approx = true} : vector<8x1xf32> -> vector<8x1xf32>
    %61 = vector.broadcast %60 : vector<8x1xf32> to vector<8x8xf32>
    %62 = arith.mulf %57, %61 : vector<8x8xf32>
    %cst_26 = arith.constant dense<0.000000e+00> : vector<8x8xf32>
    %63 = tpu.matmul %62, %49, %cst_26 {dimension_numbers = #tpu.dot_dimension_numbers<[1], [0], [0], [1], [0, 0, 1, 1], [], []>} : vector<8x8xf32>, vector<8x8xf32>, vector<8x8xf32> -> vector<8x8xf32>
    %64 = vector.extract_strided_slice %31 {offsets = [0, 8], sizes = [8, 8], strides = [1, 1]} : vector<8x32xf32> to vector<8x8xf32>
    %65 = vector.extract_strided_slice %37 {offsets = [0, 8], sizes = [8, 8], strides = [1, 1]} : vector<8x32xf32> to vector<8x8xf32>
    %66 = vector.extract_strided_slice %38 {offsets = [0, 8], sizes = [8, 8], strides = [1, 1]} : vector<8x32xf32> to vector<8x8xf32>
    %67 = tpu.transpose %65, [1, 0] : vector<8x8xf32> -> vector<8x8xf32>
    %cst_27 = arith.constant dense<0.000000e+00> : vector<8x8xf32>
    %68 = tpu.matmul %64, %67, %cst_27 {dimension_numbers = #tpu.dot_dimension_numbers<[1], [0], [0], [1], [0, 0, 1, 1], [], []>} : vector<8x8xf32>, vector<8x8xf32>, vector<8x8xf32> -> vector<8x8xf32>
    %69 = arith.addf %68, %46 : vector<8x8xf32>
    %cst_28 = arith.constant dense<0xFF800000> : vector<8xf32>
    %70 = vector.multi_reduction <maximumf>, %69, %cst_28 [1] : vector<8x8xf32> to vector<8xf32>
    %71 = vector.shape_cast %70 : vector<8xf32> to vector<8x1xf32>
    %72 = vector.broadcast %71 : vector<8x1xf32> to vector<8x8xf32>
    %73 = arith.subf %69, %72 : vector<8x8xf32>
    %74 = math.exp %73 : vector<8x8xf32>
    %cst_29 = arith.constant dense<0.000000e+00> : vector<8xf32>
    %75 = vector.multi_reduction <add>, %74, %cst_29 [1] : vector<8x8xf32> to vector<8xf32>
    %76 = vector.shape_cast %75 : vector<8xf32> to vector<8x1xf32>
    %77 = tpu.reciprocal %76 {approx = true} : vector<8x1xf32> -> vector<8x1xf32>
    %78 = vector.broadcast %77 : vector<8x1xf32> to vector<8x8xf32>
    %79 = arith.mulf %74, %78 : vector<8x8xf32>
    %cst_30 = arith.constant dense<0.000000e+00> : vector<8x8xf32>
    %80 = tpu.matmul %79, %66, %cst_30 {dimension_numbers = #tpu.dot_dimension_numbers<[1], [0], [0], [1], [0, 0, 1, 1], [], []>} : vector<8x8xf32>, vector<8x8xf32>, vector<8x8xf32> -> vector<8x8xf32>
    %81 = vector.extract_strided_slice %31 {offsets = [0, 16], sizes = [8, 8], strides = [1, 1]} : vector<8x32xf32> to vector<8x8xf32>
    %82 = vector.extract_strided_slice %37 {offsets = [0, 16], sizes = [8, 8], strides = [1, 1]} : vector<8x32xf32> to vector<8x8xf32>
    %83 = vector.extract_strided_slice %38 {offsets = [0, 16], sizes = [8, 8], strides = [1, 1]} : vector<8x32xf32> to vector<8x8xf32>
    %84 = tpu.transpose %82, [1, 0] : vector<8x8xf32> -> vector<8x8xf32>
    %cst_31 = arith.constant dense<0.000000e+00> : vector<8x8xf32>
    %85 = tpu.matmul %81, %84, %cst_31 {dimension_numbers = #tpu.dot_dimension_numbers<[1], [0], [0], [1], [0, 0, 1, 1], [], []>} : vector<8x8xf32>, vector<8x8xf32>, vector<8x8xf32> -> vector<8x8xf32>
    %86 = arith.addf %85, %46 : vector<8x8xf32>
    %cst_32 = arith.constant dense<0xFF800000> : vector<8xf32>
    %87 = vector.multi_reduction <maximumf>, %86, %cst_32 [1] : vector<8x8xf32> to vector<8xf32>
    %88 = vector.shape_cast %87 : vector<8xf32> to vector<8x1xf32>
    %89 = vector.broadcast %88 : vector<8x1xf32> to vector<8x8xf32>
    %90 = arith.subf %86, %89 : vector<8x8xf32>
    %91 = math.exp %90 : vector<8x8xf32>
    %cst_33 = arith.constant dense<0.000000e+00> : vector<8xf32>
    %92 = vector.multi_reduction <add>, %91, %cst_33 [1] : vector<8x8xf32> to vector<8xf32>
    %93 = vector.shape_cast %92 : vector<8xf32> to vector<8x1xf32>
    %94 = tpu.reciprocal %93 {approx = true} : vector<8x1xf32> -> vector<8x1xf32>
    %95 = vector.broadcast %94 : vector<8x1xf32> to vector<8x8xf32>
    %96 = arith.mulf %91, %95 : vector<8x8xf32>
    %cst_34 = arith.constant dense<0.000000e+00> : vector<8x8xf32>
    %97 = tpu.matmul %96, %83, %cst_34 {dimension_numbers = #tpu.dot_dimension_numbers<[1], [0], [0], [1], [0, 0, 1, 1], [], []>} : vector<8x8xf32>, vector<8x8xf32>, vector<8x8xf32> -> vector<8x8xf32>
    %98 = vector.extract_strided_slice %31 {offsets = [0, 24], sizes = [8, 8], strides = [1, 1]} : vector<8x32xf32> to vector<8x8xf32>
    %99 = vector.extract_strided_slice %37 {offsets = [0, 24], sizes = [8, 8], strides = [1, 1]} : vector<8x32xf32> to vector<8x8xf32>
    %100 = vector.extract_strided_slice %38 {offsets = [0, 24], sizes = [8, 8], strides = [1, 1]} : vector<8x32xf32> to vector<8x8xf32>
    %101 = tpu.transpose %99, [1, 0] : vector<8x8xf32> -> vector<8x8xf32>
    %cst_35 = arith.constant dense<0.000000e+00> : vector<8x8xf32>
    %102 = tpu.matmul %98, %101, %cst_35 {dimension_numbers = #tpu.dot_dimension_numbers<[1], [0], [0], [1], [0, 0, 1, 1], [], []>} : vector<8x8xf32>, vector<8x8xf32>, vector<8x8xf32> -> vector<8x8xf32>
    %103 = arith.addf %102, %46 : vector<8x8xf32>
    %cst_36 = arith.constant dense<0xFF800000> : vector<8xf32>
    %104 = vector.multi_reduction <maximumf>, %103, %cst_36 [1] : vector<8x8xf32> to vector<8xf32>
    %105 = vector.shape_cast %104 : vector<8xf32> to vector<8x1xf32>
    %106 = vector.broadcast %105 : vector<8x1xf32> to vector<8x8xf32>
    %107 = arith.subf %103, %106 : vector<8x8xf32>
    %108 = math.exp %107 : vector<8x8xf32>
    %cst_37 = arith.constant dense<0.000000e+00> : vector<8xf32>
    %109 = vector.multi_reduction <add>, %108, %cst_37 [1] : vector<8x8xf32> to vector<8xf32>
    %110 = vector.shape_cast %109 : vector<8xf32> to vector<8x1xf32>
    %111 = tpu.reciprocal %110 {approx = true} : vector<8x1xf32> -> vector<8x1xf32>
    %112 = vector.broadcast %111 : vector<8x1xf32> to vector<8x8xf32>
    %113 = arith.mulf %108, %112 : vector<8x8xf32>
    %cst_38 = arith.constant dense<0.000000e+00> : vector<8x8xf32>
    %114 = tpu.matmul %113, %100, %cst_38 {dimension_numbers = #tpu.dot_dimension_numbers<[1], [0], [0], [1], [0, 0, 1, 1], [], []>} : vector<8x8xf32>, vector<8x8xf32>, vector<8x8xf32> -> vector<8x8xf32>
    %115 = tpu.concatenate %63, %80, %97, %114 in 1 : vector<8x8xf32>, vector<8x8xf32>, vector<8x8xf32>, vector<8x8xf32> -> vector<8x32xf32>
    %116 = arith.truncf %115 : vector<8x32xf32> to vector<8x32xbf16>
    %c0_39 = arith.constant 0 : index
    %c0_40 = arith.constant 0 : index
    %117 = vector.load %arg9[%c0_39, %c0_40] : memref<32x32xbf16, #tpu.memory_space<vmem>>, vector<32x32xbf16>
    %cst_41 = arith.constant dense<0.000000e+00> : vector<8x32xf32>
    %118 = tpu.matmul %116, %117, %cst_41 {dimension_numbers = #tpu.dot_dimension_numbers<[1], [0], [0], [1], [0, 0, 1, 1], [], []>} : vector<8x32xbf16>, vector<32x32xbf16>, vector<8x32xf32> -> vector<8x32xf32>
    %c0_42 = arith.constant 0 : index
    %c0_43 = arith.constant 0 : index
    %119 = vector.load %arg10[%c0_42, %c0_43] : memref<1x32xf32, #tpu.memory_space<vmem>>, vector<1x32xf32>
    %120 = vector.broadcast %119 : vector<1x32xf32> to vector<8x32xf32>
    %121 = arith.addf %118, %120 : vector<8x32xf32>
    %122 = arith.addf %1, %121 : vector<8x32xf32>
    %c0_44 = arith.constant 0 : index
    %c0_45 = arith.constant 0 : index
    %123 = vector.load %arg11[%c0_44, %c0_45] : memref<1x32xf32, #tpu.memory_space<vmem>>, vector<1x32xf32>
    %c0_46 = arith.constant 0 : index
    %c0_47 = arith.constant 0 : index
    %124 = vector.load %arg12[%c0_46, %c0_47] : memref<1x32xf32, #tpu.memory_space<vmem>>, vector<1x32xf32>
    %cst_48 = arith.constant dense<0.000000e+00> : vector<8xf32>
    %125 = vector.multi_reduction <add>, %122, %cst_48 [1] : vector<8x32xf32> to vector<8xf32>
    %126 = vector.shape_cast %125 : vector<8xf32> to vector<8x1xf32>
    %cst_49 = arith.constant 3.200000e+01 : f32
    %127 = vector.broadcast %cst_49 : f32 to vector<8x1xf32>
    %128 = arith.divf %126, %127 : vector<8x1xf32>
    %129 = vector.broadcast %128 : vector<8x1xf32> to vector<8x32xf32>
    %130 = arith.subf %122, %129 : vector<8x32xf32>
    %131 = arith.mulf %130, %130 : vector<8x32xf32>
    %cst_50 = arith.constant dense<0.000000e+00> : vector<8xf32>
    %132 = vector.multi_reduction <add>, %131, %cst_50 [1] : vector<8x32xf32> to vector<8xf32>
    %133 = vector.shape_cast %132 : vector<8xf32> to vector<8x1xf32>
    %cst_51 = arith.constant 3.200000e+01 : f32
    %134 = vector.broadcast %cst_51 : f32 to vector<8x1xf32>
    %135 = arith.divf %133, %134 : vector<8x1xf32>
    %cst_52 = arith.constant 9.99999974E-6 : f32
    %136 = vector.broadcast %cst_52 : f32 to vector<8x1xf32>
    %137 = arith.addf %135, %136 : vector<8x1xf32>
    %138 = math.rsqrt %137 : vector<8x1xf32>
    %139 = vector.broadcast %138 : vector<8x1xf32> to vector<8x32xf32>
    %140 = arith.mulf %130, %139 : vector<8x32xf32>
    %141 = vector.broadcast %123 : vector<1x32xf32> to vector<8x32xf32>
    %142 = arith.mulf %140, %141 : vector<8x32xf32>
    %143 = vector.broadcast %124 : vector<1x32xf32> to vector<8x32xf32>
    %144 = arith.addf %142, %143 : vector<8x32xf32>
    %145 = arith.truncf %144 : vector<8x32xf32> to vector<8x32xbf16>
    %c0_53 = arith.constant 0 : index
    %c0_54 = arith.constant 0 : index
    %146 = vector.load %arg13[%c0_53, %c0_54] : memref<32x128xbf16, #tpu.memory_space<vmem>>, vector<32x128xbf16>
    %cst_55 = arith.constant dense<0.000000e+00> : vector<8x128xf32>
    %147 = tpu.matmul %145, %146, %cst_55 {dimension_numbers = #tpu.dot_dimension_numbers<[1], [0], [0], [1], [0, 0, 1, 1], [], []>} : vector<8x32xbf16>, vector<32x128xbf16>, vector<8x128xf32> -> vector<8x128xf32>
    %c0_56 = arith.constant 0 : index
    %c0_57 = arith.constant 0 : index
    %148 = vector.load %arg14[%c0_56, %c0_57] : memref<1x128xf32, #tpu.memory_space<vmem>>, vector<1x128xf32>
    %149 = vector.broadcast %148 : vector<1x128xf32> to vector<8x128xf32>
    %150 = arith.addf %147, %149 : vector<8x128xf32>
    %cst_58 = arith.constant 5.000000e-01 : f32
    %151 = vector.broadcast %cst_58 : f32 to vector<8x128xf32>
    %152 = arith.mulf %151, %150 : vector<8x128xf32>
    %cst_59 = arith.constant 0.636619746 : f32
    %153 = math.sqrt %cst_59 : f32
    %cst_60 = arith.constant 4.471500e-02 : f32
    %154 = vector.broadcast %cst_60 : f32 to vector<8x128xf32>
    %155 = arith.mulf %154, %150 : vector<8x128xf32>
    %156 = arith.mulf %155, %150 : vector<8x128xf32>
    %157 = arith.mulf %156, %150 : vector<8x128xf32>
    %158 = arith.addf %150, %157 : vector<8x128xf32>
    %159 = vector.broadcast %153 : f32 to vector<8x128xf32>
    %160 = arith.mulf %159, %158 : vector<8x128xf32>
    %161 = math.tanh %160 : vector<8x128xf32>
    %cst_61 = arith.constant 1.000000e+00 : f32
    %162 = vector.broadcast %cst_61 : f32 to vector<8x128xf32>
    %163 = arith.addf %162, %161 : vector<8x128xf32>
    %164 = arith.mulf %152, %163 : vector<8x128xf32>
    %165 = arith.truncf %164 : vector<8x128xf32> to vector<8x128xbf16>
    %c0_62 = arith.constant 0 : index
    %c0_63 = arith.constant 0 : index
    %166 = vector.load %arg15[%c0_62, %c0_63] : memref<128x32xbf16, #tpu.memory_space<vmem>>, vector<128x32xbf16>
    %cst_64 = arith.constant dense<0.000000e+00> : vector<8x32xf32>
    %167 = tpu.matmul %165, %166, %cst_64 {dimension_numbers = #tpu.dot_dimension_numbers<[1], [0], [0], [1], [0, 0, 1, 1], [], []>} : vector<8x128xbf16>, vector<128x32xbf16>, vector<8x32xf32> -> vector<8x32xf32>
    %c0_65 = arith.constant 0 : index
    %c0_66 = arith.constant 0 : index
    %168 = vector.load %arg16[%c0_65, %c0_66] : memref<1x32xf32, #tpu.memory_space<vmem>>, vector<1x32xf32>
    %169 = vector.broadcast %168 : vector<1x32xf32> to vector<8x32xf32>
    %170 = arith.addf %167, %169 : vector<8x32xf32>
    %171 = arith.addf %122, %170 : vector<8x32xf32>
    %c0_67 = arith.constant 0 : index
    %c0_68 = arith.constant 0 : index
    %c0_69 = arith.constant 0 : index
    %172 = vector.load %arg17[%c0_67, %c0_68, %c0_69] : memref<1x8x32xf32, #tpu.memory_space<vmem>>, vector<1x8x32xf32>
    %173 = vector.shape_cast %172 : vector<1x8x32xf32> to vector<8x32xf32>
    %174 = vector.shape_cast %171 : vector<8x32xf32> to vector<1x8x32xf32>
    tpu.vector_store %arg17[%c0_67, %c0_68, %c0_69], %174 {strides = array<i32>} : memref<1x8x32xf32, #tpu.memory_space<vmem>>, vector<1x8x32xf32>,
    return
  }
  func.func @transform_0(%arg0: i32, %arg1: i32) -> (i32, i32, i32) {
    %c0_i32 = arith.constant 0 : i32
    %c0_i32_0 = arith.constant 0 : i32
    %c0_i32_1 = arith.constant 0 : i32
    return %arg0, %c0_i32, %c0_i32_0 : i32, i32, i32
  }
  func.func @transform_1(%arg0: i32, %arg1: i32) -> (i32, i32) {
    %c0_i32 = arith.constant 0 : i32
    %c0_i32_0 = arith.constant 0 : i32
    %c0_i32_1 = arith.constant 0 : i32
    return %c0_i32, %c0_i32_0 : i32, i32
  }
  func.func @transform_2(%arg0: i32, %arg1: i32) -> (i32, i32) {
    %c0_i32 = arith.constant 0 : i32
    %c0_i32_0 = arith.constant 0 : i32
    %c0_i32_1 = arith.constant 0 : i32
    return %c0_i32, %c0_i32_0 : i32, i32
  }
  func.func @transform_3(%arg0: i32, %arg1: i32) -> (i32, i32) {
    %c0_i32 = arith.constant 0 : i32
    %c0_i32_0 = arith.constant 0 : i32
    %c0_i32_1 = arith.constant 0 : i32
    return %c0_i32, %c0_i32_0 : i32, i32
  }
  func.func @transform_4(%arg0: i32, %arg1: i32) -> (i32, i32) {
    %c0_i32 = arith.constant 0 : i32
    %c0_i32_0 = arith.constant 0 : i32
    %c0_i32_1 = arith.constant 0 : i32
    return %c0_i32, %c0_i32_0 : i32, i32
  }
  func.func @transform_5(%arg0: i32, %arg1: i32) -> (i32, i32) {
    %c0_i32 = arith.constant 0 : i32
    %c0_i32_0 = arith.constant 0 : i32
    %c0_i32_1 = arith.constant 0 : i32
    return %c0_i32, %c0_i32_0 : i32, i32
  }
  func.func @transform_6(%arg0: i32, %arg1: i32) -> (i32, i32) {
    %c0_i32 = arith.constant 0 : i32
    %c0_i32_0 = arith.constant 0 : i32
    %c0_i32_1 = arith.constant 0 : i32
    return %c0_i32, %c0_i32_0 : i32, i32
  }
  func.func @transform_7(%arg0: i32, %arg1: i32) -> (i32, i32) {
    %c0_i32 = arith.constant 0 : i32
    %c0_i32_0 = arith.constant 0 : i32
    %c0_i32_1 = arith.constant 0 : i32
    return %c0_i32, %c0_i32_0 : i32, i32
  }
  func.func @transform_8(%arg0: i32, %arg1: i32) -> (i32, i32) {
    %c0_i32 = arith.constant 0 : i32
    %c0_i32_0 = arith.constant 0 : i32
    %c0_i32_1 = arith.constant 0 : i32
    return %c0_i32, %c0_i32_0 : i32, i32
  }
  func.func @transform_9(%arg0: i32, %arg1: i32) -> (i32, i32) {
    %c0_i32 = arith.constant 0 : i32
    %c0_i32_0 = arith.constant 0 : i32
    %c0_i32_1 = arith.constant 0 : i32
    return %c0_i32, %c0_i32_0 : i32, i32
  }
  func.func @transform_10(%arg0: i32, %arg1: i32) -> (i32, i32) {
    %c0_i32 = arith.constant 0 : i32
    %c0_i32_0 = arith.constant 0 : i32
    %c0_i32_1 = arith.constant 0 : i32
    return %c0_i32, %c0_i32_0 : i32, i32
  }
  func.func @transform_11(%arg0: i32, %arg1: i32) -> (i32, i32) {
    %c0_i32 = arith.constant 0 : i32
    %c0_i32_0 = arith.constant 0 : i32
    %c0_i32_1 = arith.constant 0 : i32
    return %c0_i32, %c0_i32_0 : i32, i32
  }
  func.func @transform_12(%arg0: i32, %arg1: i32) -> (i32, i32) {
    %c0_i32 = arith.constant 0 : i32
    %c0_i32_0 = arith.constant 0 : i32
    %c0_i32_1 = arith.constant 0 : i32
    return %c0_i32, %c0_i32_0 : i32, i32
  }
  func.func @transform_13(%arg0: i32, %arg1: i32) -> (i32, i32) {
    %c0_i32 = arith.constant 0 : i32
    %c0_i32_0 = arith.constant 0 : i32
    %c0_i32_1 = arith.constant 0 : i32
    return %c0_i32, %c0_i32_0 : i32, i32
  }
  func.func @transform_14(%arg0: i32, %arg1: i32) -> (i32, i32) {
    %c0_i32 = arith.constant 0 : i32
    %c0_i32_0 = arith.constant 0 : i32
    %c0_i32_1 = arith.constant 0 : i32
    return %c0_i32, %c0_i32_0 : i32, i32
  }
  func.func @transform_15(%arg0: i32, %arg1: i32) -> (i32, i32, i32) {
    %c0_i32 = arith.constant 0 : i32
    %c0_i32_0 = arith.constant 0 : i32
    return %arg0, %arg1, %c0_i32 : i32, i32, i32
  }
}

module attributes {stable_mosaic.version = 11 : i64} {
  func.func @transformer_block_kernel(%arg0: i32, %arg1: i32, %arg2: memref<1x8x32xf32, #tpu.memory_space<vmem>>, %arg3: memref<1x32xf32, #tpu.memory_space<vmem>>, %arg4: memref<1x32xf32, #tpu.memory_space<vmem>>, %arg5: memref<32x32xbf16, #tpu.memory_space<vmem>>, %arg6: memref<1x32xf32, #tpu.memory_space<vmem>>, %arg7: memref<32x64xbf16, #tpu.memory_space<vmem>>, %arg8: memref<1x64xf32, #tpu.memory_space<vmem>>, %arg9: memref<32x32xbf16, #tpu.memory_space<vmem>>, %arg10: memref<1x32xf32, #tpu.memory_space<vmem>>, %arg11: memref<1x32xf32, #tpu.memory_space<vmem>>, %arg12: memref<1x32xf32, #tpu.memory_space<vmem>>, %arg13: memref<32x128xbf16, #tpu.memory_space<vmem>>, %arg14: memref<1x128xf32, #tpu.memory_space<vmem>>, %arg15: memref<128x32xbf16, #tpu.memory_space<vmem>>, %arg16: memref<1x32xf32, #tpu.memory_space<vmem>>, %arg17: memref<1x8x32xf32, #tpu.memory_space<vmem>>) attributes {dimension_semantics = [#tpu.dimension_semantics<parallel>, #tpu.dimension_semantics<parallel>], iteration_bounds = array<i64: 2, 1>, scalar_prefetch = 0 : i64, scratch_operands = 0 : i64, tpu.core_type = #tpu.core_type<tc>, window_params = [{transform_indices = @transform_0, window_bounds = array<i64: 1, 8, 32>}, {pipeline_mode = #tpu.pipeline_mode<synchronous>, transform_indices = @transform_1, window_bounds = array<i64: 1, 32>}, {pipeline_mode = #tpu.pipeline_mode<synchronous>, transform_indices = @transform_2, window_bounds = array<i64: 1, 32>}, {pipeline_mode = #tpu.pipeline_mode<synchronous>, transform_indices = @transform_3, window_bounds = array<i64: 32, 32>}, {pipeline_mode = #tpu.pipeline_mode<synchronous>, transform_indices = @transform_4, window_bounds = array<i64: 1, 32>}, {pipeline_mode = #tpu.pipeline_mode<synchronous>, transform_indices = @transform_5, window_bounds = array<i64: 32, 64>}, {pipeline_mode = #tpu.pipeline_mode<synchronous>, transform_indices = @transform_6, window_bounds = array<i64: 1, 64>}, {pipeline_mode = #tpu.pipeline_mode<synchronous>, transform_indices = @transform_7, window_bounds = array<i64: 32, 32>}, {pipeline_mode = #tpu.pipeline_mode<synchronous>, transform_indices = @transform_8, window_bounds = array<i64: 1, 32>}, {pipeline_mode = #tpu.pipeline_mode<synchronous>, transform_indices = @transform_9, window_bounds = array<i64: 1, 32>}, {pipeline_mode = #tpu.pipeline_mode<synchronous>, transform_indices = @transform_10, window_bounds = array<i64: 1, 32>}, {pipeline_mode = #tpu.pipeline_mode<synchronous>, transform_indices = @transform_11, window_bounds = array<i64: 32, 128>}, {pipeline_mode = #tpu.pipeline_mode<synchronous>, transform_indices = @transform_12, window_bounds = array<i64: 1, 128>}, {pipeline_mode = #tpu.pipeline_mode<synchronous>, transform_indices = @transform_13, window_bounds = array<i64: 128, 32>}, {pipeline_mode = #tpu.pipeline_mode<synchronous>, transform_indices = @transform_14, window_bounds = array<i64: 1, 32>}, {transform_indices = @transform_15, window_bounds = array<i64: 1, 8, 32>}]} {
    %c0 = arith.constant 0 : index
    %c0_0 = arith.constant 0 : index
    %c0_1 = arith.constant 0 : index
    %0 = vector.load %arg2[%c0, %c0_0, %c0_1] : memref<1x8x32xf32, #tpu.memory_space<vmem>>, vector<1x8x32xf32>
    %1 = vector.shape_cast %0 : vector<1x8x32xf32> to vector<8x32xf32>
    %c0_2 = arith.constant 0 : index
    %c0_3 = arith.constant 0 : index
    %2 = vector.load %arg3[%c0_2, %c0_3] : memref<1x32xf32, #tpu.memory_space<vmem>>, vector<1x32xf32>
    %c0_4 = arith.constant 0 : index
    %c0_5 = arith.constant 0 : index
    %3 = vector.load %arg4[%c0_4, %c0_5] : memref<1x32xf32, #tpu.memory_space<vmem>>, vector<1x32xf32>
    %cst = arith.constant dense<0.000000e+00> : vector<8xf32>
    %4 = vector.multi_reduction <add>, %1, %cst [1] : vector<8x32xf32> to vector<8xf32>
    %5 = vector.shape_cast %4 : vector<8xf32> to vector<8x1xf32>
    %cst_6 = arith.constant 3.200000e+01 : f32
    %6 = vector.broadcast %cst_6 : f32 to vector<8x1xf32>
    %7 = arith.divf %5, %6 : vector<8x1xf32>
    %8 = vector.broadcast %7 : vector<8x1xf32> to vector<8x32xf32>
    %9 = arith.subf %1, %8 : vector<8x32xf32>
    %10 = arith.mulf %9, %9 : vector<8x32xf32>
    %cst_7 = arith.constant dense<0.000000e+00> : vector<8xf32>
    %11 = vector.multi_reduction <add>, %10, %cst_7 [1] : vector<8x32xf32> to vector<8xf32>
    %12 = vector.shape_cast %11 : vector<8xf32> to vector<8x1xf32>
    %cst_8 = arith.constant 3.200000e+01 : f32
    %13 = vector.broadcast %cst_8 : f32 to vector<8x1xf32>
    %14 = arith.divf %12, %13 : vector<8x1xf32>
    %cst_9 = arith.constant 9.99999974E-6 : f32
    %15 = vector.broadcast %cst_9 : f32 to vector<8x1xf32>
    %16 = arith.addf %14, %15 : vector<8x1xf32>
    %17 = math.rsqrt %16 : vector<8x1xf32>
    %18 = vector.broadcast %17 : vector<8x1xf32> to vector<8x32xf32>
    %19 = arith.mulf %9, %18 : vector<8x32xf32>
    %20 = vector.broadcast %2 : vector<1x32xf32> to vector<8x32xf32>
    %21 = arith.mulf %19, %20 : vector<8x32xf32>
    %22 = vector.broadcast %3 : vector<1x32xf32> to vector<8x32xf32>
    %23 = arith.addf %21, %22 : vector<8x32xf32>
    %24 = arith.truncf %23 : vector<8x32xf32> to vector<8x32xbf16>
    %c0_10 = arith.constant 0 : index
    %c0_11 = arith.constant 0 : index
    %25 = vector.load %arg5[%c0_10, %c0_11] : memref<32x32xbf16, #tpu.memory_space<vmem>>, vector<32x32xbf16>
    %cst_12 = arith.constant dense<0.000000e+00> : vector<8x32xf32>
    %26 = tpu.matmul %24, %25, %cst_12 {dimension_numbers = #tpu.dot_dimension_numbers<[1], [0], [0], [1], [0, 0, 1, 1], [], []>} : vector<8x32xbf16>, vector<32x32xbf16>, vector<8x32xf32> -> vector<8x32xf32>
    %c0_13 = arith.constant 0 : index
    %c0_14 = arith.constant 0 : index
    %27 = vector.load %arg6[%c0_13, %c0_14] : memref<1x32xf32, #tpu.memory_space<vmem>>, vector<1x32xf32>
    %28 = vector.broadcast %27 : vector<1x32xf32> to vector<8x32xf32>
    %29 = arith.addf %26, %28 : vector<8x32xf32>
    %cst_15 = arith.constant 0.353553385 : f32
    %30 = vector.broadcast %cst_15 : f32 to vector<8x32xf32>
    %31 = arith.mulf %29, %30 : vector<8x32xf32>
    %c0_16 = arith.constant 0 : index
    %c0_17 = arith.constant 0 : index
    %32 = vector.load %arg7[%c0_16, %c0_17] : memref<32x64xbf16, #tpu.memory_space<vmem>>, vector<32x64xbf16>
    %cst_18 = arith.constant dense<0.000000e+00> : vector<8x64xf32>
    %33 = tpu.matmul %24, %32, %cst_18 {dimension_numbers = #tpu.dot_dimension_numbers<[1], [0], [0], [1], [0, 0, 1, 1], [], []>} : vector<8x32xbf16>, vector<32x64xbf16>, vector<8x64xf32> -> vector<8x64xf32>
    %c0_19 = arith.constant 0 : index
    %c0_20 = arith.constant 0 : index
    %34 = vector.load %arg8[%c0_19, %c0_20] : memref<1x64xf32, #tpu.memory_space<vmem>>, vector<1x64xf32>
    %35 = vector.broadcast %34 : vector<1x64xf32> to vector<8x64xf32>
    %36 = arith.addf %33, %35 : vector<8x64xf32>
    %37 = vector.extract_strided_slice %36 {offsets = [0, 0], sizes = [8, 32], strides = [1, 1]} : vector<8x64xf32> to vector<8x32xf32>
    %38 = vector.extract_strided_slice %36 {offsets = [0, 32], sizes = [8, 32], strides = [1, 1]} : vector<8x64xf32> to vector<8x32xf32>
    %39 = tpu.iota {dimensions = array<i32: 0>} : vector<8x8xi32>
    %c0_i32 = arith.constant 0 : i32
    %40 = vector.broadcast %c0_i32 : i32 to vector<8x8xi32>
    %41 = arith.addi %39, %40 : vector<8x8xi32>
    %42 = tpu.iota {dimensions = array<i32: 1>} : vector<8x8xi32>
    %43 = arith.cmpi sgt, %42, %41 : vector<8x8xi32>
    %cst_21 = arith.constant -1.000000e+05 : f32
    %cst_22 = arith.constant 0.000000e+00 : f32
    %44 = vector.broadcast %cst_21 : f32 to vector<8x8xf32>
    %45 = vector.broadcast %cst_22 : f32 to vector<8x8xf32>
    %46 = arith.select %43, %44, %45 : vector<8x8xi1>, vector<8x8xf32>
    %47 = vector.extract_strided_slice %31 {offsets = [0, 0], sizes = [8, 8], strides = [1, 1]} : vector<8x32xf32> to vector<8x8xf32>
    %48 = vector.extract_strided_slice %37 {offsets = [0, 0], sizes = [8, 8], strides = [1, 1]} : vector<8x32xf32> to vector<8x8xf32>
    %49 = vector.extract_strided_slice %38 {offsets = [0, 0], sizes = [8, 8], strides = [1, 1]} : vector<8x32xf32> to vector<8x8xf32>
    %50 = tpu.transpose %48, [1, 0] : vector<8x8xf32> -> vector<8x8xf32>
    %cst_23 = arith.constant dense<0.000000e+00> : vector<8x8xf32>
    %51 = tpu.matmul %47, %50, %cst_23 {dimension_numbers = #tpu.dot_dimension_numbers<[1], [0], [0], [1], [0, 0, 1, 1], [], []>} : vector<8x8xf32>, vector<8x8xf32>, vector<8x8xf32> -> vector<8x8xf32>
    %52 = arith.addf %51, %46 : vector<8x8xf32>
    %cst_24 = arith.constant dense<0xFF800000> : vector<8xf32>
    %53 = vector.multi_reduction <maximumf>, %52, %cst_24 [1] : vector<8x8xf32> to vector<8xf32>
    %54 = vector.shape_cast %53 : vector<8xf32> to vector<8x1xf32>
    %55 = vector.broadcast %54 : vector<8x1xf32> to vector<8x8xf32>
    %56 = arith.subf %52, %55 : vector<8x8xf32>
    %57 = math.exp %56 : vector<8x8xf32>
    %cst_25 = arith.constant dense<0.000000e+00> : vector<8xf32>
    %58 = vector.multi_reduction <add>, %57, %cst_25 [1] : vector<8x8xf32> to vector<8xf32>
    %59 = vector.shape_cast %58 : vector<8xf32> to vector<8x1xf32>
    %60 = tpu.reciprocal %59 {approx = true} : vector<8x1xf32> -> vector<8x1xf32>
    %61 = vector.broadcast %60 : vector<8x1xf32> to vector<8x8xf32>
    %62 = arith.mulf %57, %61 : vector<8x8xf32>
    %cst_26 = arith.constant dense<0.000000e+00> : vector<8x8xf32>
    %63 = tpu.matmul %62, %49, %cst_26 {dimension_numbers = #tpu.dot_dimension_numbers<[1], [0], [0], [1], [0, 0, 1, 1], [], []>} : vector<8x8xf32>, vector<8x8xf32>, vector<8x8xf32> -> vector<8x8xf32>
    %64 = vector.extract_strided_slice %31 {offsets = [0, 8], sizes = [8, 8], strides = [1, 1]} : vector<8x32xf32> to vector<8x8xf32>
    %65 = vector.extract_strided_slice %37 {offsets = [0, 8], sizes = [8, 8], strides = [1, 1]} : vector<8x32xf32> to vector<8x8xf32>
    %66 = vector.extract_strided_slice %38 {offsets = [0, 8], sizes = [8, 8], strides = [1, 1]} : vector<8x32xf32> to vector<8x8xf32>
    %67 = tpu.transpose %65, [1, 0] : vector<8x8xf32> -> vector<8x8xf32>
    %cst_27 = arith.constant dense<0.000000e+00> : vector<8x8xf32>
    %68 = tpu.matmul %64, %67, %cst_27 {dimension_numbers = #tpu.dot_dimension_numbers<[1], [0], [0], [1], [0, 0, 1, 1], [], []>} : vector<8x8xf32>, vector<8x8xf32>, vector<8x8xf32> -> vector<8x8xf32>
    %69 = arith.addf %68, %46 : vector<8x8xf32>
    %cst_28 = arith.constant dense<0xFF800000> : vector<8xf32>
    %70 = vector.multi_reduction <maximumf>, %69, %cst_28 [1] : vector<8x8xf32> to vector<8xf32>
    %71 = vector.shape_cast %70 : vector<8xf32> to vector<8x1xf32>
    %72 = vector.broadcast %71 : vector<8x1xf32> to vector<8x8xf32>
    %73 = arith.subf %69, %72 : vector<8x8xf32>
    %74 = math.exp %73 : vector<8x8xf32>
    %cst_29 = arith.constant dense<0.000000e+00> : vector<8xf32>
    %75 = vector.multi_reduction <add>, %74, %cst_29 [1] : vector<8x8xf32> to vector<8xf32>
    %76 = vector.shape_cast %75 : vector<8xf32> to vector<8x1xf32>
    %77 = tpu.reciprocal %76 {approx = true} : vector<8x1xf32> -> vector<8x1xf32>
    %78 = vector.broadcast %77 : vector<8x1xf32> to vector<8x8xf32>
    %79 = arith.mulf %74, %78 : vector<8x8xf32>
    %cst_30 = arith.constant dense<0.000000e+00> : vector<8x8xf32>
    %80 = tpu.matmul %79, %66, %cst_30 {dimension_numbers = #tpu.dot_dimension_numbers<[1], [0], [0], [1], [0, 0, 1, 1], [], []>} : vector<8x8xf32>, vector<8x8xf32>, vector<8x8xf32> -> vector<8x8xf32>
    %81 = vector.extract_strided_slice %31 {offsets = [0, 16], sizes = [8, 8], strides = [1, 1]} : vector<8x32xf32> to vector<8x8xf32>
    %82 = vector.extract_strided_slice %37 {offsets = [0, 16], sizes = [8, 8], strides = [1, 1]} : vector<8x32xf32> to vector<8x8xf32>
    %83 = vector.extract_strided_slice %38 {offsets = [0, 16], sizes = [8, 8], strides = [1, 1]} : vector<8x32xf32> to vector<8x8xf32>
    %84 = tpu.transpose %82, [1, 0] : vector<8x8xf32> -> vector<8x8xf32>
    %cst_31 = arith.constant dense<0.000000e+00> : vector<8x8xf32>
    %85 = tpu.matmul %81, %84, %cst_31 {dimension_numbers = #tpu.dot_dimension_numbers<[1], [0], [0], [1], [0, 0, 1, 1], [], []>} : vector<8x8xf32>, vector<8x8xf32>, vector<8x8xf32> -> vector<8x8xf32>
    %86 = arith.addf %85, %46 : vector<8x8xf32>
    %cst_32 = arith.constant dense<0xFF800000> : vector<8xf32>
    %87 = vector.multi_reduction <maximumf>, %86, %cst_32 [1] : vector<8x8xf32> to vector<8xf32>
    %88 = vector.shape_cast %87 : vector<8xf32> to vector<8x1xf32>
    %89 = vector.broadcast %88 : vector<8x1xf32> to vector<8x8xf32>
    %90 = arith.subf %86, %89 : vector<8x8xf32>
    %91 = math.exp %90 : vector<8x8xf32>
    %cst_33 = arith.constant dense<0.000000e+00> : vector<8xf32>
    %92 = vector.multi_reduction <add>, %91, %cst_33 [1] : vector<8x8xf32> to vector<8xf32>
    %93 = vector.shape_cast %92 : vector<8xf32> to vector<8x1xf32>
    %94 = tpu.reciprocal %93 {approx = true} : vector<8x1xf32> -> vector<8x1xf32>
    %95 = vector.broadcast %94 : vector<8x1xf32> to vector<8x8xf32>
    %96 = arith.mulf %91, %95 : vector<8x8xf32>
    %cst_34 = arith.constant dense<0.000000e+00> : vector<8x8xf32>
    %97 = tpu.matmul %96, %83, %cst_34 {dimension_numbers = #tpu.dot_dimension_numbers<[1], [0], [0], [1], [0, 0, 1, 1], [], []>} : vector<8x8xf32>, vector<8x8xf32>, vector<8x8xf32> -> vector<8x8xf32>
    %98 = vector.extract_strided_slice %31 {offsets = [0, 24], sizes = [8, 8], strides = [1, 1]} : vector<8x32xf32> to vector<8x8xf32>
    %99 = vector.extract_strided_slice %37 {offsets = [0, 24], sizes = [8, 8], strides = [1, 1]} : vector<8x32xf32> to vector<8x8xf32>
    %100 = vector.extract_strided_slice %38 {offsets = [0, 24], sizes = [8, 8], strides = [1, 1]} : vector<8x32xf32> to vector<8x8xf32>
    %101 = tpu.transpose %99, [1, 0] : vector<8x8xf32> -> vector<8x8xf32>
    %cst_35 = arith.constant dense<0.000000e+00> : vector<8x8xf32>
    %102 = tpu.matmul %98, %101, %cst_35 {dimension_numbers = #tpu.dot_dimension_numbers<[1], [0], [0], [1], [0, 0, 1, 1], [], []>} : vector<8x8xf32>, vector<8x8xf32>, vector<8x8xf32> -> vector<8x8xf32>
    %103 = arith.addf %102, %46 : vector<8x8xf32>
    %cst_36 = arith.constant dense<0xFF800000> : vector<8xf32>
    %104 = vector.multi_reduction <maximumf>, %103, %cst_36 [1] : vector<8x8xf32> to vector<8xf32>
    %105 = vector.shape_cast %104 : vector<8xf32> to vector<8x1xf32>
    %106 = vector.broadcast %105 : vector<8x1xf32> to vector<8x8xf32>
    %107 = arith.subf %103, %106 : vector<8x8xf32>
    %108 = math.exp %107 : vector<8x8xf32>
    %cst_37 = arith.constant dense<0.000000e+00> : vector<8xf32>
    %109 = vector.multi_reduction <add>, %108, %cst_37 [1] : vector<8x8xf32> to vector<8xf32>
    %110 = vector.shape_cast %109 : vector<8xf32> to vector<8x1xf32>
    %111 = tpu.reciprocal %110 {approx = true} : vector<8x1xf32> -> vector<8x1xf32>
    %112 = vector.broadcast %111 : vector<8x1xf32> to vector<8x8xf32>
    %113 = arith.mulf %108, %112 : vector<8x8xf32>
    %cst_38 = arith.constant dense<0.000000e+00> : vector<8x8xf32>
    %114 = tpu.matmul %113, %100, %cst_38 {dimension_numbers = #tpu.dot_dimension_numbers<[1], [0], [0], [1], [0, 0, 1, 1], [], []>} : vector<8x8xf32>, vector<8x8xf32>, vector<8x8xf32> -> vector<8x8xf32>
    %115 = tpu.concatenate %63, %80, %97, %114 in 1 : vector<8x8xf32>, vector<8x8xf32>, vector<8x8xf32>, vector<8x8xf32> -> vector<8x32xf32>
    %116 = arith.truncf %115 : vector<8x32xf32> to vector<8x32xbf16>
    %c0_39 = arith.constant 0 : index
    %c0_40 = arith.constant 0 : index
    %117 = vector.load %arg9[%c0_39, %c0_40] : memref<32x32xbf16, #tpu.memory_space<vmem>>, vector<32x32xbf16>
    %cst_41 = arith.constant dense<0.000000e+00> : vector<8x32xf32>
    %118 = tpu.matmul %116, %117, %cst_41 {dimension_numbers = #tpu.dot_dimension_numbers<[1], [0], [0], [1], [0, 0, 1, 1], [], []>} : vector<8x32xbf16>, vector<32x32xbf16>, vector<8x32xf32> -> vector<8x32xf32>
    %c0_42 = arith.constant 0 : index
    %c0_43 = arith.constant 0 : index
    %119 = vector.load %arg10[%c0_42, %c0_43] : memref<1x32xf32, #tpu.memory_space<vmem>>, vector<1x32xf32>
    %120 = vector.broadcast %119 : vector<1x32xf32> to vector<8x32xf32>
    %121 = arith.addf %118, %120 : vector<8x32xf32>
    %122 = arith.addf %1, %121 : vector<8x32xf32>
    %c0_44 = arith.constant 0 : index
    %c0_45 = arith.constant 0 : index
    %123 = vector.load %arg11[%c0_44, %c0_45] : memref<1x32xf32, #tpu.memory_space<vmem>>, vector<1x32xf32>
    %c0_46 = arith.constant 0 : index
    %c0_47 = arith.constant 0 : index
    %124 = vector.load %arg12[%c0_46, %c0_47] : memref<1x32xf32, #tpu.memory_space<vmem>>, vector<1x32xf32>
    %cst_48 = arith.constant dense<0.000000e+00> : vector<8xf32>
    %125 = vector.multi_reduction <add>, %122, %cst_48 [1] : vector<8x32xf32> to vector<8xf32>
    %126 = vector.shape_cast %125 : vector<8xf32> to vector<8x1xf32>
    %cst_49 = arith.constant 3.200000e+01 : f32
    %127 = vector.broadcast %cst_49 : f32 to vector<8x1xf32>
    %128 = arith.divf %126, %127 : vector<8x1xf32>
    %129 = vector.broadcast %128 : vector<8x1xf32> to vector<8x32xf32>
    %130 = arith.subf %122, %129 : vector<8x32xf32>
    %131 = arith.mulf %130, %130 : vector<8x32xf32>
    %cst_50 = arith.constant dense<0.000000e+00> : vector<8xf32>
    %132 = vector.multi_reduction <add>, %131, %cst_50 [1] : vector<8x32xf32> to vector<8xf32>
    %133 = vector.shape_cast %132 : vector<8xf32> to vector<8x1xf32>
    %cst_51 = arith.constant 3.200000e+01 : f32
    %134 = vector.broadcast %cst_51 : f32 to vector<8x1xf32>
    %135 = arith.divf %133, %134 : vector<8x1xf32>
    %cst_52 = arith.constant 9.99999974E-6 : f32
    %136 = vector.broadcast %cst_52 : f32 to vector<8x1xf32>
    %137 = arith.addf %135, %136 : vector<8x1xf32>
    %138 = math.rsqrt %137 : vector<8x1xf32>
    %139 = vector.broadcast %138 : vector<8x1xf32> to vector<8x32xf32>
    %140 = arith.mulf %130, %139 : vector<8x32xf32>
    %141 = vector.broadcast %123 : vector<1x32xf32> to vector<8x32xf32>
    %142 = arith.mulf %140, %141 : vector<8x32xf32>
    %143 = vector.broadcast %124 : vector<1x32xf32> to vector<8x32xf32>
    %144 = arith.addf %142, %143 : vector<8x32xf32>
    %145 = arith.truncf %144 : vector<8x32xf32> to vector<8x32xbf16>
    %c0_53 = arith.constant 0 : index
    %c0_54 = arith.constant 0 : index
    %146 = vector.load %arg13[%c0_53, %c0_54] : memref<32x128xbf16, #tpu.memory_space<vmem>>, vector<32x128xbf16>
    %cst_55 = arith.constant dense<0.000000e+00> : vector<8x128xf32>
    %147 = tpu.matmul %145, %146, %cst_55 {dimension_numbers = #tpu.dot_dimension_numbers<[1], [0], [0], [1], [0, 0, 1, 1], [], []>} : vector<8x32xbf16>, vector<32x128xbf16>, vector<8x128xf32> -> vector<8x128xf32>
    %c0_56 = arith.constant 0 : index
    %c0_57 = arith.constant 0 : index
    %148 = vector.load %arg14[%c0_56, %c0_57] : memref<1x128xf32, #tpu.memory_space<vmem>>, vector<1x128xf32>
    %149 = vector.broadcast %148 : vector<1x128xf32> to vector<8x128xf32>
    %150 = arith.addf %147, %149 : vector<8x128xf32>
    %cst_58 = arith.constant 5.000000e-01 : f32
    %151 = vector.broadcast %cst_58 : f32 to vector<8x128xf32>
    %152 = arith.mulf %151, %150 : vector<8x128xf32>
    %cst_59 = arith.constant 0.636619746 : f32
    %153 = math.sqrt %cst_59 : f32
    %cst_60 = arith.constant 4.471500e-02 : f32
    %154 = vector.broadcast %cst_60 : f32 to vector<8x128xf32>
    %155 = arith.mulf %154, %150 : vector<8x128xf32>
    %156 = arith.mulf %155, %150 : vector<8x128xf32>
    %157 = arith.mulf %156, %150 : vector<8x128xf32>
    %158 = arith.addf %150, %157 : vector<8x128xf32>
    %159 = vector.broadcast %153 : f32 to vector<8x128xf32>
    %160 = arith.mulf %159, %158 : vector<8x128xf32>
    %161 = math.tanh %160 : vector<8x128xf32>
    %cst_61 = arith.constant 1.000000e+00 : f32
    %162 = vector.broadcast %cst_61 : f32 to vector<8x128xf32>
    %163 = arith.addf %162, %161 : vector<8x128xf32>
    %164 = arith.mulf %152, %163 : vector<8x128xf32>
    %165 = arith.truncf %164 : vector<8x128xf32> to vector<8x128xbf16>
    %c0_62 = arith.constant 0 : index
    %c0_63 = arith.constant 0 : index
    %166 = vector.load %arg15[%c0_62, %c0_63] : memref<128x32xbf16, #tpu.memory_space<vmem>>, vector<128x32xbf16>
    %cst_64 = arith.constant dense<0.000000e+00> : vector<8x32xf32>
    %167 = tpu.matmul %165, %166, %cst_64 {dimension_numbers = #tpu.dot_dimension_numbers<[1], [0], [0], [1], [0, 0, 1, 1], [], []>} : vector<8x128xbf16>, vector<128x32xbf16>, vector<8x32xf32> -> vector<8x32xf32>
    %c0_65 = arith.constant 0 : index
    %c0_66 = arith.constant 0 : index
    %168 = vector.load %arg16[%c0_65, %c0_66] : memref<1x32xf32, #tpu.memory_space<vmem>>, vector<1x32xf32>
    %169 = vector.broadcast %168 : vector<1x32xf32> to vector<8x32xf32>
    %170 = arith.addf %167, %169 : vector<8x32xf32>
    %171 = arith.addf %122, %170 : vector<8x32xf32>
    %c0_67 = arith.constant 0 : index
    %c0_68 = arith.constant 0 : index
    %c0_69 = arith.constant 0 : index
    %172 = vector.load %arg17[%c0_67, %c0_68, %c0_69] : memref<1x8x32xf32, #tpu.memory_space<vmem>>, vector<1x8x32xf32>
    %173 = vector.shape_cast %172 : vector<1x8x32xf32> to vector<8x32xf32>
    %174 = vector.shape_cast %171 : vector<8x32xf32> to vector<1x8x32xf32>
    tpu.vector_store %arg17[%c0_67, %c0_68, %c0_69], %174 {strides = array<i32>} : memref<1x8x32xf32, #tpu.memory_space<vmem>>, vector<1x8x32xf32>,
    return
  }
  func.func @transform_0(%arg0: i32, %arg1: i32) -> (i32, i32, i32) {
    %c0_i32 = arith.constant 0 : i32
    %c0_i32_0 = arith.constant 0 : i32
    %c0_i32_1 = arith.constant 0 : i32
    return %arg0, %c0_i32, %c0_i32_0 : i32, i32, i32
  }
  func.func @transform_1(%arg0: i32, %arg1: i32) -> (i32, i32) {
    %c0_i32 = arith.constant 0 : i32
    %c0_i32_0 = arith.constant 0 : i32
    %c0_i32_1 = arith.constant 0 : i32
    return %c0_i32, %c0_i32_0 : i32, i32
  }
  func.func @transform_2(%arg0: i32, %arg1: i32) -> (i32, i32) {
    %c0_i32 = arith.constant 0 : i32
    %c0_i32_0 = arith.constant 0 : i32
    %c0_i32_1 = arith.constant 0 : i32
    return %c0_i32, %c0_i32_0 : i32, i32
  }
  func.func @transform_3(%arg0: i32, %arg1: i32) -> (i32, i32) {
    %c0_i32 = arith.constant 0 : i32
    %c0_i32_0 = arith.constant 0 : i32
    %c0_i32_1 = arith.constant 0 : i32
    return %c0_i32, %c0_i32_0 : i32, i32
  }
  func.func @transform_4(%arg0: i32, %arg1: i32) -> (i32, i32) {
    %c0_i32 = arith.constant 0 : i32
    %c0_i32_0 = arith.constant 0 : i32
    %c0_i32_1 = arith.constant 0 : i32
    return %c0_i32, %c0_i32_0 : i32, i32
  }
  func.func @transform_5(%arg0: i32, %arg1: i32) -> (i32, i32) {
    %c0_i32 = arith.constant 0 : i32
    %c0_i32_0 = arith.constant 0 : i32
    %c0_i32_1 = arith.constant 0 : i32
    return %c0_i32, %c0_i32_0 : i32, i32
  }
  func.func @transform_6(%arg0: i32, %arg1: i32) -> (i32, i32) {
    %c0_i32 = arith.constant 0 : i32
    %c0_i32_0 = arith.constant 0 : i32
    %c0_i32_1 = arith.constant 0 : i32
    return %c0_i32, %c0_i32_0 : i32, i32
  }
  func.func @transform_7(%arg0: i32, %arg1: i32) -> (i32, i32) {
    %c0_i32 = arith.constant 0 : i32
    %c0_i32_0 = arith.constant 0 : i32
    %c0_i32_1 = arith.constant 0 : i32
    return %c0_i32, %c0_i32_0 : i32, i32
  }
  func.func @transform_8(%arg0: i32, %arg1: i32) -> (i32, i32) {
    %c0_i32 = arith.constant 0 : i32
    %c0_i32_0 = arith.constant 0 : i32
    %c0_i32_1 = arith.constant 0 : i32
    return %c0_i32, %c0_i32_0 : i32, i32
  }
  func.func @transform_9(%arg0: i32, %arg1: i32) -> (i32, i32) {
    %c0_i32 = arith.constant 0 : i32
    %c0_i32_0 = arith.constant 0 : i32
    %c0_i32_1 = arith.constant 0 : i32
    return %c0_i32, %c0_i32_0 : i32, i32
  }
  func.func @transform_10(%arg0: i32, %arg1: i32) -> (i32, i32) {
    %c0_i32 = arith.constant 0 : i32
    %c0_i32_0 = arith.constant 0 : i32
    %c0_i32_1 = arith.constant 0 : i32
    return %c0_i32, %c0_i32_0 : i32, i32
  }
  func.func @transform_11(%arg0: i32, %arg1: i32) -> (i32, i32) {
    %c0_i32 = arith.constant 0 : i32
    %c0_i32_0 = arith.constant 0 : i32
    %c0_i32_1 = arith.constant 0 : i32
    return %c0_i32, %c0_i32_0 : i32, i32
  }
  func.func @transform_12(%arg0: i32, %arg1: i32) -> (i32, i32) {
    %c0_i32 = arith.constant 0 : i32
    %c0_i32_0 = arith.constant 0 : i32
    %c0_i32_1 = arith.constant 0 : i32
    return %c0_i32, %c0_i32_0 : i32, i32
  }
  func.func @transform_13(%arg0: i32, %arg1: i32) -> (i32, i32) {
    %c0_i32 = arith.constant 0 : i32
    %c0_i32_0 = arith.constant 0 : i32
    %c0_i32_1 = arith.constant 0 : i32
    return %c0_i32, %c0_i32_0 : i32, i32
  }
  func.func @transform_14(%arg0: i32, %arg1: i32) -> (i32, i32) {
    %c0_i32 = arith.constant 0 : i32
    %c0_i32_0 = arith.constant 0 : i32
    %c0_i32_1 = arith.constant 0 : i32
    return %c0_i32, %c0_i32_0 : i32, i32
  }
  func.func @transform_15(%arg0: i32, %arg1: i32) -> (i32, i32, i32) {
    %c0_i32 = arith.constant 0 : i32
    %c0_i32_0 = arith.constant 0 : i32
    return %arg0, %arg1, %c0_i32 : i32, i32, i32
  }
}

</mosaic_0001>

<bundles_post_ra>
// kernel: tpu_custom_call.1
= control target key start
LH: loop header
LB: loop body
LE: loop exit
PB: predicated region body
PF: predicated region fallthrough
CT: control target
= control target key end

     0   :  { %s2606_s0 = inlined_call_operand.hbm [shape: f32[2,8,32], index: 0, kind: input, shape index: {}, may-alias: {0,15}]   ;;  %s2607_s1 = inlined_call_operand.vmem [shape: f32[1,32], index: 1, kind: input, shape index: {}]   ;;  %s2608_s2 = inlined_call_operand.vmem [shape: f32[1,32], index: 2, kind: input, shape index: {}]   ;;  %s2609_s3 = inlined_call_operand.vmem [shape: bf16[32,32], index: 3, kind: input, shape index: {}]   ;;  %s2610_s4 = inlined_call_operand.vmem [shape: f32[1,32], index: 4, kind: input, shape index: {}]   ;;  %s2611_s5 = inlined_call_operand.vmem [shape: bf16[32,64], index: 5, kind: input, shape index: {}]   ;;  %s2612_s6 = inlined_call_operand.vmem [shape: f32[1,64], index: 6, kind: input, shape index: {}]   ;;  %s2613_s7 = inlined_call_operand.vmem [shape: bf16[32,32], index: 7, kind: input, shape index: {}]   ;;  %s2614_s8 = inlined_call_operand.vmem [shape: f32[1,32], index: 8, kind: input, shape index: {}]   ;;  %s2615_s9 = inlined_call_operand.vmem [shape: f32[1,32], index: 9, kind: input, shape index: {}]   ;;  %s2616_s10 = inlined_call_operand.vmem [shape: f32[1,32], index: 10, kind: input, shape index: {}]   ;;  %s2617_s11 = inlined_call_operand.vmem [shape: bf16[32,128], index: 11, kind: input, shape index: {}]   ;;  %s2618_s12 = inlined_call_operand.vmem [shape: f32[1,128], index: 12, kind: input, shape index: {}]   ;;  %s2619_s13 = inlined_call_operand.vmem [shape: bf16[128,32], index: 13, kind: input, shape index: {}]   ;;  %s2620_s14 = inlined_call_operand.vmem [shape: f32[1,32], index: 14, kind: input, shape index: {}]   ;;  %s2621_s15 = inlined_call_operand.hbm [shape: f32[2,8,32], index: 15, kind: output, shape index: {}, may-alias: {0,15}]  }
   0x1   :  { %2627 = sst [smem:[#allocation13_spill]] %s2606_s0 }
   0x2   :  { %2628 = sst [smem:[#allocation14_spill]] %s2607_s1 }
   0x3   :  { %2629 = sst [smem:[#allocation15_spill]] %s2620_s14 }
   0x4   :  { %2630 = sst [smem:[#allocation16_spill]] %s2621_s15 }
   0x5   :  { %20 = vsyncpa [#allocation3], 0 }
   0x6   :  { %22 = vsyncpa [#allocation3 + $0x1], 0 }
   0x7   :  { %23 = vsyncpa [#allocation4], 0 }
   0x8   :  { %25 = vsyncpa [#allocation4 + $0x1], 0  ;;  %s2254_s18 = smov 0   ;;  %s2256_s19 = smov 0  }
   0x9   :  { %s2258_s20 = smov 0   ;;  %s2260_s21 = smov 0  }
   0xa   :  { %s2262_s22 = smov 0   ;;  %s2264_s23 = smov 0  }
   0xb LB: > { %2631 = sst [smem:[#allocation8_spill]] %s2138_s18  ;;  %s1751_s24 = sadd.s32 4294967295, %s2158_s23   ;;  %s2158_s23 = sphi %s2264_s23, %s31_s23   ;;  %s2154_s22 = sphi %s2262_s22, %s2655_s22   ;;  %s2150_s21 = sphi %s2260_s21, %s2654_s21   ;;  %s2146_s20 = sphi %s2258_s20, %s2658_s20   ;;  %s2142_s19 = sphi %s2256_s19, %s2657_s19   ;;  %s2138_s18 = sphi %s2254_s18, %s2656_s18  }
   0xc   : > { %2632 = sst [smem:[#allocation9_spill]] %s2150_s21  ;;  %s1752_s25 = sadd.s32 4294967294, %s2158_s23  }
   0xd   : > { %2633 = sst [smem:[#allocation10_spill]] %s2154_s22  ;;  %s43_s26 = sadd.s32 1, %s2154_s22 }
   0xe   : > { %s50_s27 = sadd.s32 1, %s2146_s20  ;;  %p45_p0 = scmp.ge.s32.totalorder %s43_s26, 2 }
   0xf   : > { %p57_p1 = scmp.ne.s32.totalorder %s2146_s20, %s2142_s19  ;;  %p58_p2 = scmp.eq.s32.totalorder %s2158_s23, 0 }
  0x10   : > { %p63_p3 = scmp.ne.s32.totalorder %s2142_s19, %s2138_s18  ;;  %s2660_s26 = smov (%p45_p0, %s43_s26), 0 }
  0x11   : > { %2634 = sst [smem:[#allocation11_spill]] %s2660_s26  ;;  %p2295_p4 = por %p58_p2, %p57_p1 }
  0x12   : > { %p64_p5 = scmp.eq.s32.totalorder %s1751_s24, 0  ;;  %s47_s29 = ssub.s32 %s2154_s22, %s2660_s26 }
  0x13   : > { %p383_p6 = scmp.eq.s32.totalorder %s1751_s24, 1  ;;  %p48_p7 = scmp.eq.s32.totalorder %s47_s29, 0 }
  0x14   : > { %p2301_p8 = por %p64_p5, %p63_p3  ;;  %p389_p10 = scmp.eq.s32.totalorder %s1752_s25, 1 }
  0x15   : > { %p2305_p9 = por %p383_p6, %p57_p1  ;;  %p1946_p13 = scmp.lt.s32.totalorder %s2158_s23, 2 }
  0x16   : > { %s2310_s17 = scalar_select %p48_p7, %s2146_s20, %s50_s27  }
  0x17   : > { %s2637_s16 = scalar_select %p2305_p9, 1, 0 }
  0x18   : > { %2638 = sst [smem:[#allocation12_spill]] %s2310_s17  ;;  %p2312_p11 = por %p389_p10, %p63_p3 }
  0x19   : > { %s451_s24 = sand.u32 1, %s2146_s20   ;;  %s1756_s26 = sshll.u32 %s2154_s22, 7 }
  0x1a   : > { %s2639_s18 = scalar_select %p2312_p11, 1, 0 }
  0x1b   : > { %s1755_s29 = sshll.u32 %s451_s24, 3  ;;  %s2640_s0 = sld [smem:[#allocation13_spill]] }
  0x1c   : > { %s455_s25 = scalar_lea.vmem [#allocation2], %s1755_s29  ;;  %p2329_p0 = pnand %p1946_p13, %p2295_p4 }
  0x1d   : > { %s462_s27 = sshll.u32 %s455_s25, 4  ;;  %s452_s14 = scalar_lea.sflag [#allocation3], %s451_s24  ;;  %s2325_s27 = int_to_ptr.vmem [resolvable:$true] %s462_s27 }
  0x1e   : > { %p2048_p5 = pneg %p2329_p0 }
  0x21   : > { %s2323_s21 = scalar_lea.hbm %s2640_s0, %s1756_s26  ;;  %s2051_s28 = scalar_lea.hbm %s2640_s0, 256 }
  0x22   : > { %s2046_s15 = scalar_lea.hbm %s2323_s21, 128  ;;  %p2052_p4 = scmp.lt.u32.totalorder %s2323_s21, %s2640_s0 }
  0x23   : > { %p2047_p3 = scmp.ne.s32.totalorder %s2323_s21, %s2046_s15  ;;  %p2053_p10 = scmp.lt.u32.totalorder %s2051_s28, %s2046_s15 }
  0x24   : > { %p2055_p12 = scmp.lt.u32.totalorder %s2046_s15, %s2323_s21 }
  0x25   : > { %p2049_p6 = pnand %p2048_p5, %p2047_p3  ;;  %p2054_p13 = por %p2053_p10, %p2052_p4 }
  0x27   : > { %p2050_p7 = pneg %p2049_p6  ;;  %p2056_p1 = por %p2055_p12, %p2054_p13 }
  0x29   : > { %p2057_p2 = pnand %p2056_p1, %p2050_p7 }
  0x2b   : > { %2060 = shalt.err (!%p2057_p2)
}
  0x2c   : > { %s2061_s24 = scalar_lea.vmem %s2325_s27, 128  ;;  %s2160_s26 = smov [#allocation2]  }
  0x2d   : > { %p2062_p3 = scmp.ne.s32.totalorder %s2325_s27, %s2061_s24  ;;  %s2066_s29 = sshll.u32 %s2160_s26, 4  ;;  %s2067_s29 = int_to_ptr.vmem [resolvable:$false] %s2066_s29 }
  0x2e   : > { %s2068_s22 = scalar_lea.vmem %s2067_s29, 256  ;;  %p2069_p9 = scmp.lt.s32.totalorder %s2325_s27, %s2067_s29 }
  0x2f   : > { %p2064_p6 = pnand %p2062_p3, %p2048_p5  ;;  %p2070_p4 = scmp.lt.s32.totalorder %s2068_s22, %s2061_s24 }
  0x31   : > { %p2065_p11 = pneg %p2064_p6  ;;  %p2071_p10 = por %p2070_p4, %p2069_p9 }
  0x33   : > { %p2072_p12 = pnand %p2071_p10, %p2065_p11 }
  0x35   : > { %2075 = shalt.err (!%p2072_p12)
}
  0x36   : > { %1941 = dma.hbm_to_vmem [thread:$0]  (!%p2329_p0), %s2323_s21, 128, %s2325_s27, %s452_s14  }
  0x37   : > { %p2642_p1 = scmp.lt.s32.totalorder %s2158_s23, 3  ;;  %p2643_p2 = scmp.ge.s32.totalorder %s2158_s23, 1 }
  0x39   : > { %p468_p5 = pnand %p2643_p2, %p2642_p1 }
  0x3a   : > { %s2365_s15 = sand.u32 (!%p468_p5), 1, %s2142_s19  }
  0x3b   : > { %471 = sbr.rel (%p468_p5) target bundleno = 2592 (0xa20), region = 80  ;;  %s1758_s28 = sshll.u32 (!%p468_p5), %s2365_s15, 3 }
  0x3c   : > { %s474_s25 = scalar_lea.sflag (!%p468_p5), [#allocation3], %s2365_s15  ;;  %s477_s17 = scalar_lea.vmem (!%p468_p5), [#allocation2], %s1758_s28 }
  0x42   : > { %2129 = dma.done.wait (%p2301_p8), %s474_s25, 128  }
  0x43   : > { %2131 = vsyncadd (%p2301_p8), %s474_s25, 4294967168  ;;  %vm528_vm0 = vcmask 261120   ;;  %v2375_v0 = vld [vmem:[%s477_s17] sm:$0xff]  ;;  %v2161_v8 = vmov 0.0   ;;  %vm2162_vm1 = vmmov 0   ;;  %s2644_s1 = sld [smem:[#allocation14_spill]]  ;;  %v688_v41 = vlaneseq }
  0x44   : > { %v529_v1 = vsel %vm528_vm0, %v2375_v0, 0.0  ;;  %v2008_v7 = vld [vmem:[%s2609_s3] sm:$0xff]   ;;  %1842 = vmatprep.subr.bf16.mxu1 %v2161_v8  ;;  %1846 = vmatprep.mubr.msk.bf16.mxu1 %vm2162_vm1, %v2161_v8  ;;  %v2009_v9 = vld [vmem:[%s2609_s3 + $0x8] sm:$0xff]   ;;  %s2163_s24 = smov 120   ;;  %vm694_vm2 = vcmask 64512   ;;  %s2164_s22 = smov 112  }
  0x45   : > { %530 = vadd.xlane.f32.xlu0 %v529_v1  ;;  %1843 = vmatpush3.bf16.msra.mxu1 %v2008_v7  ;;  %v1761_v16 = vld [vmem:[%s2608_s2] ss:$0 sm:$0xff]  ;;  %v2011_v21 = vld [vmem:[%s2611_s5 + $0x8] sm:$0xff]   ;;  %s2165_s25 = smov 104   ;;  %v689_v42 = vshrl.u32 %v688_v41, 7  ;;  %v691_v43 = vand.u32 127, %v688_v41 }
  0x46   : > { %1868 = vmatprep.subr.mxu0 %v2161_v8  ;;  %1844 = vmatprep.subr.bf16.mxu1 %v2161_v8  ;;  %v2010_v19 = vld [vmem:[%s2611_s5] sm:$0xff]   ;;  %s2166_s17 = smov 88   ;;  %s2167_s21 = smov 96   ;;  %vm1366_vm4 = vcmask 130048   ;;  %vm1368_vm5 = vcmask 195584  }
  0x47   : > { %1870 = vmatprep.mubr.msk.f32.mxu0 %vm2162_vm1, %v2161_v8  ;;  %v1762_v22 = vld [vmem:[%s2610_s4] ss:$0 sm:$0xff]  ;;  %vm692_vm3 = vcmp.gt.s32.totalorder %v691_v43, %v689_v42  ;;  %s2168_s27 = smov 72   ;;  %s2169_s30 = smov 80  }
  0x48   : > { %v1766_v29 = vld [vmem:[%s2612_s6] ss:$0 sm:$0xff]  ;;  %v693_v44 = vsel %vm692_vm3, -100000.0, %v2161_v8  ;;  %s523_s14 = scalar_lea.vmem [#allocation5], %s1758_s28  ;;  %s1658_s28 = scalar_lea.sflag [#allocation4], %s2365_s15 }
  0x49   : > { %1845 = vmatpush3.bf16.msra.mxu1 %v2009_v9  ;;  %v1760_v14 = vld [vmem:[%s2644_s1] ss:$0 sm:$0xff]  ;;  %p2649_p9 = scmp.ne.s32.totalorder %s2637_s16, 0 }
  0x4a   : > { %1850 = vmatprep.subr.bf16.mxu1 %v2161_v8 }
  0xd2   : > { %v531_v2 = vpop.xlane.xlu0 %530 }
  0xd3   : > { %v533_v3 = vmul.f32 0.03125, %v531_v2 }
  0xd5   : > { %v534_v4 = vsub.f32 %v2375_v0, %v533_v3 }
  0xd7   : > { %v535_v5 = vmul.f32 %v534_v4, %v534_v4 }
  0xd9   : > { %v536_v6 = vsel %vm528_vm0, %v535_v5, 0.0 }
  0xda   : > { %537 = vadd.xlane.f32.xlu0 %v536_v6 }
 0x167   : > { %v538_v10 = vpop.xlane.xlu0 %537 }
 0x168   : > { %v539_v11 = vmul.f32 0.03125, %v538_v10 }
 0x16a   : > { %v540_v12 = vadd.f32 1e-05, %v539_v11 }
 0x16c   : > { %2024 = vrsqrt.f32 %v540_v12 }
 0x176   : > { %v2025_v13 = vpop.eup %2024 }
 0x177   : > { %v542_v15 = vmul.f32 %v2025_v13, %v534_v4 }
 0x179   : > { %v549_v17 = vmul.f32 %v1760_v14, %v542_v15 }
 0x17b   : > { %v556_v18 = vadd.f32 %v1761_v16, %v549_v17 }
 0x17d   : > { %v557_v20 = vpack.c.bf16 %v556_v18, %v556_v18 }
 0x17f   : > { %1847 = vmatmul.mubr.msk.bf16.vlgmr.msra.gmra.mrb[0].mxu1 %vm528_vm0, %v557_v20 }
 0x180   : > { %1851 = vmatpush3.bf16.msra.mxu1 %v2010_v19  ;;  %1854 = vmatprep.mubr.msk.bf16.mxu1 %vm2162_vm1, %v2161_v8 }
 0x181   : > { %1852 = vmatprep.subr.bf16.mxu1 %v2161_v8 }
 0x184   : > { %1853 = vmatpush3.bf16.msra.mxu1 %v2011_v21 }
 0x185   : > { %1858 = vmatprep.subr.mxu1 %v2161_v8 }
 0x187   : > { %1855 = vmatmul.mubr.msk.bf16.vlgmr.msra.gmra.mrb[4].mxu1 %vm528_vm0, %v557_v20 }
 0x188   : > { %1860 = vmatprep.mubr.msk.f32.mxu1 %vm2162_vm1, %v2161_v8 }
 0x252   : > { %v618_v23 = vpop.f32.mrb[0].mxu1 }
 0x253   : > { %v619_v24 = vadd.f32 %v1762_v22, %v618_v23  ;;  %v1848_v25 = vpop.f32.mrb[1].mxu1 }
 0x254   : > { %v621_v26 = vpop.f32.mrb[2].mxu1 }
 0x255   : > { %v624_v27 = vmul.f32 0.35355338, %v619_v24  ;;  %v1849_v28 = vpop.f32.mrb[3].mxu1 }
 0x257   : > { %858 = vrot.lane.b32.xlu1 %v624_v27, %s2163_s24 }
 0x25a   : > { %v682_v30 = vpop.f32.mrb[4].mxu1 }
 0x25b   : > { %v2421_v31 = vadd.f32 %v1766_v29, %v682_v30  ;;  %v1856_v32 = vpop.f32.mrb[5].mxu1 }
 0x25c   : > { %v685_v33 = vpop.f32.mrb[6].mxu1 }
 0x25d   : > { %1025 = vrot.lane.b32.xlu0 %v2421_v31, %s2164_s22  ;;  %860 = vrot.lane.b32.xlu1 %v2421_v31, %s2163_s24  ;;  %v1857_v34 = vpop.f32.mrb[7].mxu1  ;;  %s1672_s24 = sshll.u32 %s523_s14, 4  ;;  %s2558_s24 = int_to_ptr.vmem [resolvable:$true] %s1672_s24 }
 0x25e   : > { %1859 = vmatpush3.xpose.msk.msra.mxu1 %vm694_vm2, %v2421_v31 }
 0x25f   : > { %1863 = vmatprep.subr.mxu1 %v2161_v8 }
 0x261   : > { %1861 = vmatmul.mubr.msk.f32.vlgmr.msra.gmra.mrb[8].mxu1 %vm694_vm2, %v624_v27  ;;  %1023 = vrot.lane.b32.xlu1 %v624_v27, %s2164_s22  ;;  %s2170_s22 = smov 8  }
 0x262   : > { %1865 = vmatprep.mubr.msk.f32.mxu1 %vm2162_vm1, %v2161_v8 }
 0x265   : > { %1190 = vrot.lane.b32.xlu1 %v2421_v31, %s2165_s25 }
 0x269   : > { %1188 = vrot.lane.b32.xlu1 %v624_v27, %s2165_s25  ;;  %s2171_s25 = smov 16  }
 0x2c9   : > { %v859_v35 = vpop.permute.xlu1 %858 }
 0x2cf   : > { %v861_v36 = vpop.permute.xlu1 %860  ;;  %v1026_v37 = vpop.permute.xlu0 %1025 }
 0x2d0   : > { %1869 = vmatpush3.xpose.msk.msra.mxu0 %vm694_vm2, %v861_v36 }
 0x2d1   : > { %1878 = vmatprep.subr.mxu0 %v2161_v8 }
 0x2d3   : > { %1871 = vmatmul.mubr.msk.f32.vlgmr.msra.gmra.mrb[0].mxu0 %vm694_vm2, %v859_v35  ;;  %v1024_v38 = vpop.permute.xlu1 %1023 }
 0x2d4   : > { %1879 = vmatpush3.xpose.msk.msra.mxu0 %vm694_vm2, %v1026_v37  ;;  %1880 = vmatprep.mubr.msk.f32.mxu0 %vm2162_vm1, %v2161_v8  ;;  %v2012_v37 = vld [vmem:[%s2613_s7] sm:$0xff]  }
 0x2d5   : > { %1888 = vmatprep.subr.mxu0 %v2161_v8 }
 0x2d7   : > { %1881 = vmatmul.mubr.msk.f32.vlgmr.msra.gmra.mrb[2].mxu0 %vm694_vm2, %v1024_v38  ;;  %v1191_v39 = vpop.permute.xlu1 %1190  ;;  %v2013_v38 = vld [vmem:[%s2613_s7 + $0x8] sm:$0xff]  }
 0x2d8   : > { %1889 = vmatpush3.xpose.msk.msra.mxu0 %vm694_vm2, %v1191_v39  ;;  %1890 = vmatprep.mubr.msk.f32.mxu0 %vm2162_vm1, %v2161_v8 }
 0x2d9   : > { %1898 = vmatprep.subr.bf16.mxu0 %v2161_v8 }
 0x2db   : > { %v1189_v40 = vpop.permute.xlu1 %1188 }
 0x2dc   : > { %1891 = vmatmul.mubr.msk.f32.vlgmr.msra.gmra.mrb[4].mxu0 %vm694_vm2, %v1189_v40 }
 0x2dd   : > { %1902 = vmatprep.mubr.msk.bf16.mxu0 %vm2162_vm1, %v2161_v8  ;;  %1899 = vmatpush3.bf16.msra.mxu0 %v2012_v37 }
 0x2de   : > { %1900 = vmatprep.subr.bf16.mxu0 %v2161_v8 }
 0x2e1   : > { %1901 = vmatpush3.bf16.msra.mxu0 %v2013_v38 }
 0x2e2   : > { %1914 = vmatprep.subr.bf16.mxu0 %v2161_v8 }
 0x334   : > { %v767_v45 = vpop.f32.mrb[8].mxu1 }
 0x335   : > { %v768_v46 = vadd.f32 %v767_v45, %v693_v44  ;;  %v1862_v47 = vpop.f32.mrb[9].mxu1 }
 0x337   : > { %v771_v48 = vsel %vm694_vm2, %v768_v46, -inf }
 0x338   : > { %772 = vmax.xlane.f32.xlu1 %v771_v48 }
 0x3a6   : > { %v932_v49 = vpop.f32.mrb[0].mxu0 }
 0x3a7   : > { %v933_v50 = vadd.f32 %v932_v49, %v693_v44  ;;  %v1872_v51 = vpop.f32.mrb[1].mxu0 }
 0x3a9   : > { %v936_v52 = vsel %vm694_vm2, %v933_v50, -inf }
 0x3aa   : > { %937 = vmax.xlane.f32.xlu0 %v936_v52  ;;  %v1097_v53 = vpop.f32.mrb[2].mxu0  ;;  %v1782_v52 = vld [vmem:[%s2614_s8] ss:$0 sm:$0xff] }
 0x3ab   : > { %v1098_v54 = vadd.f32 %v1097_v53, %v693_v44  ;;  %v1882_v55 = vpop.f32.mrb[3].mxu0 }
 0x3ad   : > { %v1101_v56 = vsel %vm694_vm2, %v1098_v54, -inf }
 0x3ae   : > { %1102 = vmax.xlane.f32.xlu1 %v1101_v56 }
 0x3af   : > { %v1262_v57 = vpop.f32.mrb[4].mxu0 }
 0x3b0   : > { %v1263_v58 = vadd.f32 %v1262_v57, %v693_v44  ;;  %v1892_v59 = vpop.f32.mrb[5].mxu0 }
 0x3b2   : > { %v1266_v60 = vsel %vm694_vm2, %v1263_v58, -inf }
 0x3b3   : > { %1267 = vmax.xlane.f32.xlu1 %v1266_v60 }
 0x3c4   : > { %947 = vrot.lane.b32.xlu1 %v2421_v31, %s2166_s17  ;;  %s2172_s17 = smov 24  }
 0x3c5   : > { %v773_v61 = vpop.xlane.xlu1 %772 }
 0x3c6   : > { %v774_v62 = vsub.f32 %v768_v46, %v773_v61 }
 0x3c8   : > { %v775_v63 = vmul.f32 1.442695, %v774_v62 }
 0x3ca   : > { %2026 = vpow2.f32 %v775_v63 }
 0x3d4   : > { %v2027_v1 = vpop.eup %2026 }
 0x3d5   : > { %v777_v2 = vsel %vm694_vm2, %v2027_v1, 0.0 }
 0x3d6   : > { %778 = vadd.xlane.f32.xlu0 %v777_v2  ;;  %v2014_v2 = vld [vmem:[%s2617_s11] sm:$0xff]  }
 0x3ec   : > { %782 = vrot.lane.b32.xlu0 %v2421_v31, %s2167_s21 }
 0x437   : > { %v938_v3 = vpop.xlane.xlu0 %937 }
 0x438   : > { %v939_v4 = vsub.f32 %v933_v50, %v938_v3  ;;  %v2016_v3 = vld [vmem:[%s2619_s13] sm:$0xff]  }
 0x43a   : > { %v940_v5 = vmul.f32 1.442695, %v939_v4 }
 0x43b   : > { %v1103_v6 = vpop.xlane.xlu1 %1102 }
 0x43c   : > { %2028 = vpow2.f32 %v940_v5  ;;  %v1104_v7 = vsub.f32 %v1098_v54, %v1103_v6 }
 0x43e   : > { %v1105_v9 = vmul.f32 1.442695, %v1104_v7 }
 0x440   : > { %2030 = vpow2.f32 %v1105_v9  ;;  %v1268_v10 = vpop.xlane.xlu1 %1267  ;;  %v1786_v9 = vld [vmem:[%s2615_s9] ss:$0 sm:$0xff] }
 0x441   : > { %v1269_v11 = vsub.f32 %v1263_v58, %v1268_v10 }
 0x443   : > { %v1270_v12 = vmul.f32 1.442695, %v1269_v11  ;;  %v1787_v11 = vld [vmem:[%s2616_s10] ss:$0 sm:$0xff] }
 0x444   : > { %v948_v23 = vpop.permute.xlu1 %947 }
 0x445   : > { %2032 = vpow2.f32 %v1270_v12 }
 0x446   : > { %v2029_v13 = vpop.eup %2028 }
 0x447   : > { %v942_v14 = vsel %vm694_vm2, %v2029_v13, 0.0 }
 0x448   : > { %943 = vadd.xlane.f32.xlu1 %v942_v14 }
 0x44a   : > { %v2031_v15 = vpop.eup %2030 }
 0x44b   : > { %v1107_v16 = vsel %vm694_vm2, %v2031_v15, 0.0 }
 0x44c   : > { %1108 = vadd.xlane.f32.xlu0 %v1107_v16  ;;  %v2018_v16 = vld [vmem:[%s2619_s13 + $0x10] sm:$0xff]  }
 0x44f   : > { %v2033_v17 = vpop.eup %2032 }
 0x450   : > { %v1272_v18 = vsel %vm694_vm2, %v2033_v17, 0.0 }
 0x451   : > { %1273 = vadd.xlane.f32.xlu1 %v1272_v18  ;;  %v2020_v18 = vld [vmem:[%s2619_s13 + $0x20] sm:$0xff]  }
 0x462   : > { %1277 = vrot.lane.b32.xlu0 %v2421_v31, %s2168_s27  ;;  %1112 = vrot.lane.b32.xlu1 %v2421_v31, %s2169_s30  ;;  %s2646_s27 = sld [smem:[#allocation15_spill]] }
 0x463   : > { %v779_v19 = vpop.xlane.xlu0 %778 }
 0x464   : > { %2034 = vrcp.f32 %v779_v19  ;;  %v2021_v19 = vld [vmem:[%s2619_s13 + $0x28] sm:$0xff]  }
 0x467   : > { %v783_v20 = vpop.permute.xlu0 %782 }
 0x468   : > { %1864 = vmatpush3.msra.mxu1 %v783_v20  ;;  %v2022_v20 = vld [vmem:[%s2619_s13 + $0x30] sm:$0xff]   ;;  %v1792_v37 = vld [vmem:[%s2646_s27] ss:$0 sm:$0xff] }
 0x469   : > { %1873 = vmatprep.subr.mxu1 %v2161_v8 }
 0x46e   : > { %v2035_v21 = vpop.eup %2034 }
 0x46f   : > { %v781_v22 = vmul.f32 %v2035_v21, %v2027_v1  ;;  %v2023_v21 = vld [vmem:[%s2619_s13 + $0x38] sm:$0xff]  }
 0x471   : > { %1866 = vmatmul.mubr.msk.f32.vlgmr.msra.gmra.mrb[10].mxu1 %vm694_vm2, %v781_v22  ;;  %v1788_v22 = vld [vmem:[%s2618_s12] ss:$0 sm:$0xff] }
 0x472   : > { %1874 = vmatpush3.msra.mxu1 %v948_v23  ;;  %1875 = vmatprep.mubr.msk.f32.mxu1 %vm2162_vm1, %v2161_v8 }
 0x473   : > { %1883 = vmatprep.subr.mxu1 %v2161_v8 }
 0x4d5   : > { %v944_v24 = vpop.xlane.xlu1 %943 }
 0x4d6   : > { %2036 = vrcp.f32 %v944_v24 }
 0x4d9   : > { %v1109_v25 = vpop.xlane.xlu0 %1108 }
 0x4da   : > { %2038 = vrcp.f32 %v1109_v25 }
 0x4dd   : > { %v1278_v32 = vpop.permute.xlu0 %1277 }
 0x4de   : > { %v1274_v26 = vpop.xlane.xlu1 %1273 }
 0x4df   : > { %2040 = vrcp.f32 %v1274_v26 }
 0x4e0   : > { %v2037_v27 = vpop.eup %2036 }
 0x4e1   : > { %v946_v28 = vmul.f32 %v2037_v27, %v2029_v13 }
 0x4e2   : > { %v1113_v29 = vpop.permute.xlu1 %1112 }
 0x4e3   : > { %1876 = vmatmul.mubr.msk.f32.vlgmr.msra.gmra.mrb[12].mxu1 %vm694_vm2, %v946_v28 }
 0x4e4   : > { %v2039_v30 = vpop.eup %2038  ;;  %1884 = vmatpush3.msra.mxu1 %v1113_v29  ;;  %1885 = vmatprep.mubr.msk.f32.mxu1 %vm2162_vm1, %v2161_v8 }
 0x4e5   : > { %v1111_v31 = vmul.f32 %v2039_v30, %v2031_v15  ;;  %1893 = vmatprep.subr.mxu1 %v2161_v8  ;;  %v2017_v15 = vld [vmem:[%s2619_s13 + $0x8] sm:$0xff]  }
 0x4e7   : > { %1886 = vmatmul.mubr.msk.f32.vlgmr.msra.gmra.mrb[14].mxu1 %vm694_vm2, %v1111_v31 }
 0x4e8   : > { %1894 = vmatpush3.msra.mxu1 %v1278_v32  ;;  %1895 = vmatprep.mubr.msk.f32.mxu1 %vm2162_vm1, %v2161_v8 }
 0x4e9   : > { %v2041_v33 = vpop.eup %2040  ;;  %1906 = vmatprep.subr.bf16.mxu1 %v2161_v8 }
 0x4ea   : > { %v1276_v34 = vmul.f32 %v2041_v33, %v2033_v17  ;;  %v2019_v17 = vld [vmem:[%s2619_s13 + $0x18] sm:$0xff]  }
 0x4ec   : > { %1896 = vmatmul.mubr.msk.f32.vlgmr.msra.gmra.mrb[16].mxu1 %vm694_vm2, %v1276_v34 }
 0x4ed   : > { %1910 = vmatprep.mubr.msk.bf16.mxu1 %vm2162_vm1, %v2161_v8  ;;  %1907 = vmatpush3.bf16.msra.mxu1 %v2014_v2 }
 0x4ee   : > { %1908 = vmatprep.subr.bf16.mxu1 %v2161_v8 }
 0x544   : > { %v854_v35 = vpop.f32.mrb[10].mxu1 }
 0x545   : > { %v1867_v36 = vpop.f32.mrb[11].mxu1 }
 0x5b6   : > { %v1019_v39 = vpop.f32.mrb[12].mxu1 }
 0x5b7   : > { %1354 = vrot.lane.b32.xlu1 %v1019_v39, %s2170_s22  ;;  %v1877_v40 = vpop.f32.mrb[13].mxu1  ;;  %s2647_s22 = sld [smem:[#allocation16_spill]] }
 0x5ba   : > { %v1184_v41 = vpop.f32.mrb[14].mxu1 }
 0x5bb   : > { %1358 = vrot.lane.b32.xlu0 %v1184_v41, %s2171_s25  ;;  %v1887_v42 = vpop.f32.mrb[15].mxu1  ;;  %s2645_s25 = sld [smem:[#allocation9_spill]] }
 0x5bd   : > { %s2648_s0 = smov %s2647_s22 }
 0x5bf   : > { %v1349_v43 = vpop.f32.mrb[16].mxu1 }
 0x5c0   : > { %1362 = vrot.lane.b32.xlu1 %v1349_v43, %s2172_s17  ;;  %v1897_v44 = vpop.f32.mrb[17].mxu1  ;;  %s2173_s17 = smov [#allocation5]  }
 0x5c1   : > { %s1802_s30 = sshll.u32 %s2645_s25, 7  ;;  %s2076_s25 = scalar_lea.vmem %s2558_s24, 128 }
 0x5c2   : > { %s2556_s1 = scalar_lea.hbm %s2647_s22, %s1802_s30  ;;  %p2077_p8 = scmp.ne.s32.totalorder %s2558_s24, %s2076_s25 }
 0x5c3   : > { %s2080_s21 = sshll.u32 %s2173_s17, 4  ;;  %s2081_s21 = int_to_ptr.vmem [resolvable:$false] %s2080_s21 }
 0x5c4   : > { %p2078_p11 = pnand %p2077_p8, %p2649_p9  ;;  %s2082_s27 = scalar_lea.vmem %s2081_s21, 256 }
 0x5c5   : > { %p2083_p7 = scmp.lt.s32.totalorder %s2558_s24, %s2081_s21  ;;  %p2084_p13 = scmp.lt.s32.totalorder %s2082_s27, %s2076_s25 }
 0x5c6   : > { %p2079_p0 = pneg %p2078_p11 }
 0x5c7   : > { %p2085_p3 = por %p2084_p13, %p2083_p7 }
 0x5c9   : > { %p2086_p6 = pnand %p2085_p3, %p2079_p0 }
 0x629   : > { %v1355_v45 = vpop.permute.xlu1 %1354 }
 0x62a   : > { %v1365_v47 = vsel %vm694_vm2, %v854_v35, %v1355_v45 }
 0x62d   : > { %v1359_v46 = vpop.permute.xlu0 %1358 }
 0x62e   : > { %v1367_v48 = vsel %vm1366_vm4, %v1365_v47, %v1359_v46 }
 0x632   : > { %v1363_v49 = vpop.permute.xlu1 %1362 }
 0x633   : > { %v1369_v50 = vsel %vm1368_vm5, %v1367_v48, %v1363_v49 }
 0x634   : > { %v1370_v51 = vpack.c.bf16 %v1369_v50, %v1369_v50 }
 0x636   : > { %1903 = vmatmul.mubr.msk.bf16.vlgmr.msra.gmra.mrb[8].mxu0 %vm528_vm0, %v1370_v51 }
 0x637   : > { %1930 = vmatprep.mubr.msk.bf16.mxu0 %vm2162_vm1, %v2161_v8  ;;  %1915 = vmatpush3.bf16.msra.mxu0 %v2016_v3 }
 0x638   : > { %1916 = vmatprep.subr.bf16.mxu0 %v2161_v8 }
 0x63b   : > { %1917 = vmatpush3.bf16.msra.mxu0 %v2017_v15 }
 0x63c   : > { %1918 = vmatprep.subr.bf16.mxu0 %v2161_v8 }
 0x63f   : > { %1919 = vmatpush3.bf16.msra.mxu0 %v2018_v16 }
 0x640   : > { %1920 = vmatprep.subr.bf16.mxu0 %v2161_v8 }
 0x643   : > { %1921 = vmatpush3.bf16.msra.mxu0 %v2019_v17 }
 0x644   : > { %1922 = vmatprep.subr.bf16.mxu0 %v2161_v8 }
 0x647   : > { %1923 = vmatpush3.bf16.msra.mxu0 %v2020_v18 }
 0x648   : > { %1924 = vmatprep.subr.bf16.mxu0 %v2161_v8 }
 0x64b   : > { %1925 = vmatpush3.bf16.msra.mxu0 %v2021_v19 }
 0x64c   : > { %1926 = vmatprep.subr.bf16.mxu0 %v2161_v8 }
 0x64f   : > { %1927 = vmatpush3.bf16.msra.mxu0 %v2022_v20 }
 0x650   : > { %1928 = vmatprep.subr.bf16.mxu0 %v2161_v8 }
 0x653   : > { %1929 = vmatpush3.bf16.msra.mxu0 %v2023_v21 }
 0x709   : > { %v1431_v53 = vpop.f32.mrb[8].mxu0 }
 0x70a   : > { %v1432_v54 = vadd.f32 %v1782_v52, %v1431_v53  ;;  %v1904_v55 = vpop.f32.mrb[9].mxu0 }
 0x70b   : > { %v1434_v56 = vpop.f32.mrb[10].mxu0 }
 0x70c   : > { %v2492_v57 = vadd.f32 %v1432_v54, %v2375_v0  ;;  %v1905_v58 = vpop.f32.mrb[11].mxu0  ;;  %v2015_v0 = vld [vmem:[%s2617_s11 + $0x8] sm:$0xff]  }
 0x70d   : > { %1909 = vmatpush3.bf16.msra.mxu1 %v2015_v0 }
 0x70e   : > { %v1440_v59 = vsel %vm528_vm0, %v2492_v57, 0.0 }
 0x70f   : > { %1441 = vadd.xlane.f32.xlu0 %v1440_v59 }
 0x79c   : > { %v1442_v60 = vpop.xlane.xlu0 %1441 }
 0x79d   : > { %v1443_v61 = vmul.f32 0.03125, %v1442_v60 }
 0x79f   : > { %v1444_v62 = vsub.f32 %v2492_v57, %v1443_v61 }
 0x7a1   : > { %v1445_v63 = vmul.f32 %v1444_v62, %v1444_v62 }
 0x7a3   : > { %v1446_v1 = vsel %vm528_vm0, %v1445_v63, 0.0 }
 0x7a4   : > { %1447 = vadd.xlane.f32.xlu1 %v1446_v1 }
 0x831   : > { %v1448_v4 = vpop.xlane.xlu1 %1447 }
 0x832   : > { %v1449_v5 = vmul.f32 0.03125, %v1448_v4 }
 0x834   : > { %v1450_v6 = vadd.f32 1e-05, %v1449_v5 }
 0x836   : > { %2042 = vrsqrt.f32 %v1450_v6 }
 0x840   : > { %v2043_v7 = vpop.eup %2042 }
 0x841   : > { %v1452_v10 = vmul.f32 %v2043_v7, %v1444_v62 }
 0x843   : > { %v1459_v12 = vmul.f32 %v1786_v9, %v1452_v10 }
 0x845   : > { %v1466_v13 = vadd.f32 %v1787_v11, %v1459_v12 }
 0x847   : > { %v1467_v14 = vpack.c.bf16 %v1466_v13, %v1466_v13 }
 0x849   : > { %1911 = vmatmul.mubr.msk.bf16.vlgmr.msra.gmra.mrb[20].mxu1 %vm528_vm0, %v1467_v14 }
 0x91c   : > { %v1528_v23 = vpop.f32.mrb[20].mxu1 }
 0x91d   : > { %v1529_v24 = vadd.f32 %v1788_v22, %v1528_v23  ;;  %v1912_v25 = vpop.f32.mrb[21].mxu1 }
 0x91e   : > { %v1531_v26 = vpop.f32.mrb[22].mxu1 }
 0x91f   : > { %v1535_v27 = vmul.f32 0.044715, %v1529_v24  ;;  %v1913_v28 = vpop.f32.mrb[23].mxu1  ;;  %v1534_v8 = vmul.f32 0.5, %v1529_v24 }
 0x921   : > { %v1536_v29 = vmul.f32 %v1535_v27, %v1529_v24 }
 0x923   : > { %v1537_v30 = vmul.f32 %v1536_v29, %v1529_v24 }
 0x925   : > { %v1538_v31 = vadd.f32 %v1537_v30, %v1529_v24 }
 0x927   : > { %v1539_v32 = vmul.f32 0.7978845, %v1538_v31 }
 0x929   : > { %2044 = vtanh.f32 %v1539_v32 }
 0x933   : > { %v2045_v33 = vpop.eup %2044 }
 0x934   : > { %v1541_v34 = vadd.f32 1.0, %v2045_v33 }
 0x936   : > { %v1542_v35 = vmul.f32 %v1541_v34, %v1534_v8 }
 0x938   : > { %v1543_v36 = vpack.c.bf16 %v1542_v35, %v1542_v35 }
 0x93a   : > { %1931 = vmatmul.mubr.bf16.vlgmr.msra.gmra.mrb[12].mxu0 %v1543_v36 }
 0xa0d   : > { %v1649_v38 = vpop.f32.mrb[12].mxu0 }
 0xa0e   : > { %v1650_v39 = vadd.f32 %v1792_v37, %v1649_v38  ;;  %v1932_v40 = vpop.f32.mrb[13].mxu0 }
 0xa0f   : > { %v1652_v41 = vpop.f32.mrb[14].mxu0 }
 0xa10   : > { %v1655_v42 = vadd.f32 %v1650_v39, %v2492_v57  ;;  %v1933_v43 = vpop.f32.mrb[15].mxu0 }
 0xa12   : > { %1656 = vst.msk [vmem:[%s523_s14] sm:$0xff] %vm528_vm0, %v1655_v42 }
 0xa13   : > { %2089 = shalt.err (!%p2086_p6)
}
 0xa14   : > { %s2090_s15 = scalar_lea.hbm %s2556_s1, 128  ;;  %s2094_s26 = scalar_lea.hbm %s2648_s0, 256 }
 0xa15   : > { %p2091_p4 = scmp.ne.s32.totalorder %s2556_s1, %s2090_s15  ;;  %p2095_p1 = scmp.lt.u32.totalorder %s2556_s1, %s2648_s0 }
 0xa16   : > { %p2096_p2 = scmp.lt.u32.totalorder %s2094_s26, %s2090_s15  ;;  %p2098_p8 = scmp.lt.u32.totalorder %s2090_s15, %s2556_s1 }
 0xa17   : > { %p2092_p10 = pnand %p2091_p4, %p2649_p9 }
 0xa18   : > { %p2097_p5 = por %p2096_p2, %p2095_p1 }
 0xa19   : > { %p2093_p12 = pneg %p2092_p10 }
 0xa1a   : > { %p2099_p11 = por %p2098_p8, %p2097_p5 }
 0xa1c   : > { %p2100_p0 = pnand %p2099_p11, %p2093_p12 }
 0xa1e   : > { %2103 = shalt.err (!%p2100_p0)
}
 0xa1f   : > { %1936 = dma.vmem_to_hbm [thread:$0]  (%p2649_p9), %s2558_s24, 128, %s2556_s1, %s1658_s28  }
 0xa20 PF: > { %s2650_s25 = sld [smem:[#allocation8_spill]]  ;;  %p2651_p7 = scmp.ne.s32.totalorder %s2639_s18, 0 }
 0xa21   : > { %p2652_p13 = scmp.ge.s32.totalorder %s2158_s23, 2 }
 0xa23   : > { %p1943_p3 = pnand %p2652_p13, %p2651_p7 }
 0xa26   : > { %s1684_s17 = sand.u32 1, %s2650_s25  }
 0xa27   : > { %s1685_s21 = scalar_lea.sflag [#allocation4], %s1684_s17 }
 0xa28   : > { %2133 = dma.done.wait (!%p1943_p3), %s1685_s21, 128  }
 0xa29   : > { %2135 = vsyncadd (!%p1943_p3), %s1685_s21, 4294967168  ;;  %s31_s23 = sadd.s32 1, %s2158_s23   ;;  %s2653_s16 = sld [smem:[#allocation12_spill]] }
 0xa2a   : > { %p28_p6 = scmp.ge.s32.totalorder %s31_s23, 4   ;;  %s2654_s21 = sld [smem:[#allocation10_spill]] }
 0xa2b   : > { %s2655_s22 = sld [smem:[#allocation11_spill]]  ;;  %s2656_s18 = smov %s2142_s19 }
 0xa2c   : > { %s2657_s19 = smov %s2146_s20  ;;  %30 = sbr.rel (!%p28_p6) target bundleno = 11 (0xb), region = 125 }
 0xa2f   : > { %s2658_s20 = smov %s2653_s16 }
 0xa33   :  { %1690 = vsyncpa [#allocation3], 1 }
 0xa34   :  { %1692 = vsyncpa [#allocation3 + $0x1], 1 }
 0xa35   :  { %1693 = vsyncpa [#allocation4], 1 }
 0xa36   :  { %1695 = vsyncpa [#allocation4 + $0x1], 1 }

// kernel: tpu_custom_call.1
= control target key start
LH: loop header
LB: loop body
LE: loop exit
PB: predicated region body
PF: predicated region fallthrough
CT: control target
= control target key end

     0   :  { %s2606_s0 = inlined_call_operand.hbm [shape: f32[2,8,32], index: 0, kind: input, shape index: {}, may-alias: {0,15}]   ;;  %s2607_s1 = inlined_call_operand.vmem [shape: f32[1,32], index: 1, kind: input, shape index: {}]   ;;  %s2608_s2 = inlined_call_operand.vmem [shape: f32[1,32], index: 2, kind: input, shape index: {}]   ;;  %s2609_s3 = inlined_call_operand.vmem [shape: bf16[32,32], index: 3, kind: input, shape index: {}]   ;;  %s2610_s4 = inlined_call_operand.vmem [shape: f32[1,32], index: 4, kind: input, shape index: {}]   ;;  %s2611_s5 = inlined_call_operand.vmem [shape: bf16[32,64], index: 5, kind: input, shape index: {}]   ;;  %s2612_s6 = inlined_call_operand.vmem [shape: f32[1,64], index: 6, kind: input, shape index: {}]   ;;  %s2613_s7 = inlined_call_operand.vmem [shape: bf16[32,32], index: 7, kind: input, shape index: {}]   ;;  %s2614_s8 = inlined_call_operand.vmem [shape: f32[1,32], index: 8, kind: input, shape index: {}]   ;;  %s2615_s9 = inlined_call_operand.vmem [shape: f32[1,32], index: 9, kind: input, shape index: {}]   ;;  %s2616_s10 = inlined_call_operand.vmem [shape: f32[1,32], index: 10, kind: input, shape index: {}]   ;;  %s2617_s11 = inlined_call_operand.vmem [shape: bf16[32,128], index: 11, kind: input, shape index: {}]   ;;  %s2618_s12 = inlined_call_operand.vmem [shape: f32[1,128], index: 12, kind: input, shape index: {}]   ;;  %s2619_s13 = inlined_call_operand.vmem [shape: bf16[128,32], index: 13, kind: input, shape index: {}]   ;;  %s2620_s14 = inlined_call_operand.vmem [shape: f32[1,32], index: 14, kind: input, shape index: {}]   ;;  %s2621_s15 = inlined_call_operand.hbm [shape: f32[2,8,32], index: 15, kind: output, shape index: {}, may-alias: {0,15}]  }
   0x1   :  { %2627 = sst [smem:[#allocation13_spill]] %s2606_s0 }
   0x2   :  { %2628 = sst [smem:[#allocation14_spill]] %s2607_s1 }
   0x3   :  { %2629 = sst [smem:[#allocation15_spill]] %s2620_s14 }
   0x4   :  { %2630 = sst [smem:[#allocation16_spill]] %s2621_s15 }
   0x5   :  { %20 = vsyncpa [#allocation3], 0 }
   0x6   :  { %22 = vsyncpa [#allocation3 + $0x1], 0 }
   0x7   :  { %23 = vsyncpa [#allocation4], 0 }
   0x8   :  { %25 = vsyncpa [#allocation4 + $0x1], 0  ;;  %s2254_s18 = smov 0   ;;  %s2256_s19 = smov 0  }
   0x9   :  { %s2258_s20 = smov 0   ;;  %s2260_s21 = smov 0  }
   0xa   :  { %s2262_s22 = smov 0   ;;  %s2264_s23 = smov 0  }
   0xb LB: > { %2631 = sst [smem:[#allocation8_spill]] %s2138_s18  ;;  %s1751_s24 = sadd.s32 4294967295, %s2158_s23   ;;  %s2158_s23 = sphi %s2264_s23, %s31_s23   ;;  %s2154_s22 = sphi %s2262_s22, %s2655_s22   ;;  %s2150_s21 = sphi %s2260_s21, %s2654_s21   ;;  %s2146_s20 = sphi %s2258_s20, %s2658_s20   ;;  %s2142_s19 = sphi %s2256_s19, %s2657_s19   ;;  %s2138_s18 = sphi %s2254_s18, %s2656_s18  }
   0xc   : > { %2632 = sst [smem:[#allocation9_spill]] %s2150_s21  ;;  %s1752_s25 = sadd.s32 4294967294, %s2158_s23  }
   0xd   : > { %2633 = sst [smem:[#allocation10_spill]] %s2154_s22  ;;  %s43_s26 = sadd.s32 1, %s2154_s22 }
   0xe   : > { %s50_s27 = sadd.s32 1, %s2146_s20  ;;  %p45_p0 = scmp.ge.s32.totalorder %s43_s26, 2 }
   0xf   : > { %p57_p1 = scmp.ne.s32.totalorder %s2146_s20, %s2142_s19  ;;  %p58_p2 = scmp.eq.s32.totalorder %s2158_s23, 0 }
  0x10   : > { %p63_p3 = scmp.ne.s32.totalorder %s2142_s19, %s2138_s18  ;;  %s2660_s26 = smov (%p45_p0, %s43_s26), 0 }
  0x11   : > { %2634 = sst [smem:[#allocation11_spill]] %s2660_s26  ;;  %p2295_p4 = por %p58_p2, %p57_p1 }
  0x12   : > { %p64_p5 = scmp.eq.s32.totalorder %s1751_s24, 0  ;;  %s47_s29 = ssub.s32 %s2154_s22, %s2660_s26 }
  0x13   : > { %p383_p6 = scmp.eq.s32.totalorder %s1751_s24, 1  ;;  %p48_p7 = scmp.eq.s32.totalorder %s47_s29, 0 }
  0x14   : > { %p2301_p8 = por %p64_p5, %p63_p3  ;;  %p389_p10 = scmp.eq.s32.totalorder %s1752_s25, 1 }
  0x15   : > { %p2305_p9 = por %p383_p6, %p57_p1  ;;  %p1946_p13 = scmp.lt.s32.totalorder %s2158_s23, 2 }
  0x16   : > { %s2310_s17 = scalar_select %p48_p7, %s2146_s20, %s50_s27  }
  0x17   : > { %s2637_s16 = scalar_select %p2305_p9, 1, 0 }
  0x18   : > { %2638 = sst [smem:[#allocation12_spill]] %s2310_s17  ;;  %p2312_p11 = por %p389_p10, %p63_p3 }
  0x19   : > { %s451_s24 = sand.u32 1, %s2146_s20   ;;  %s1756_s26 = sshll.u32 %s2154_s22, 7 }
  0x1a   : > { %s2639_s18 = scalar_select %p2312_p11, 1, 0 }
  0x1b   : > { %s1755_s29 = sshll.u32 %s451_s24, 3  ;;  %s2640_s0 = sld [smem:[#allocation13_spill]] }
  0x1c   : > { %s455_s25 = scalar_lea.vmem [#allocation2], %s1755_s29  ;;  %p2329_p0 = pnand %p1946_p13, %p2295_p4 }
  0x1d   : > { %s462_s27 = sshll.u32 %s455_s25, 4  ;;  %s452_s14 = scalar_lea.sflag [#allocation3], %s451_s24  ;;  %s2325_s27 = int_to_ptr.vmem [resolvable:$true] %s462_s27 }
  0x1e   : > { %p2048_p5 = pneg %p2329_p0 }
  0x21   : > { %s2323_s21 = scalar_lea.hbm %s2640_s0, %s1756_s26  ;;  %s2051_s28 = scalar_lea.hbm %s2640_s0, 256 }
  0x22   : > { %s2046_s15 = scalar_lea.hbm %s2323_s21, 128  ;;  %p2052_p4 = scmp.lt.u32.totalorder %s2323_s21, %s2640_s0 }
  0x23   : > { %p2047_p3 = scmp.ne.s32.totalorder %s2323_s21, %s2046_s15  ;;  %p2053_p10 = scmp.lt.u32.totalorder %s2051_s28, %s2046_s15 }
  0x24   : > { %p2055_p12 = scmp.lt.u32.totalorder %s2046_s15, %s2323_s21 }
  0x25   : > { %p2049_p6 = pnand %p2048_p5, %p2047_p3  ;;  %p2054_p13 = por %p2053_p10, %p2052_p4 }
  0x27   : > { %p2050_p7 = pneg %p2049_p6  ;;  %p2056_p1 = por %p2055_p12, %p2054_p13 }
  0x29   : > { %p2057_p2 = pnand %p2056_p1, %p2050_p7 }
  0x2b   : > { %2060 = shalt.err (!%p2057_p2)
}
  0x2c   : > { %s2061_s24 = scalar_lea.vmem %s2325_s27, 128  ;;  %s2160_s26 = smov [#allocation2]  }
  0x2d   : > { %p2062_p3 = scmp.ne.s32.totalorder %s2325_s27, %s2061_s24  ;;  %s2066_s29 = sshll.u32 %s2160_s26, 4  ;;  %s2067_s29 = int_to_ptr.vmem [resolvable:$false] %s2066_s29 }
  0x2e   : > { %s2068_s22 = scalar_lea.vmem %s2067_s29, 256  ;;  %p2069_p9 = scmp.lt.s32.totalorder %s2325_s27, %s2067_s29 }
  0x2f   : > { %p2064_p6 = pnand %p2062_p3, %p2048_p5  ;;  %p2070_p4 = scmp.lt.s32.totalorder %s2068_s22, %s2061_s24 }
  0x31   : > { %p2065_p11 = pneg %p2064_p6  ;;  %p2071_p10 = por %p2070_p4, %p2069_p9 }
  0x33   : > { %p2072_p12 = pnand %p2071_p10, %p2065_p11 }
  0x35   : > { %2075 = shalt.err (!%p2072_p12)
}
  0x36   : > { %1941 = dma.hbm_to_vmem [thread:$0]  (!%p2329_p0), %s2323_s21, 128, %s2325_s27, %s452_s14  }
  0x37   : > { %p2642_p1 = scmp.lt.s32.totalorder %s2158_s23, 3  ;;  %p2643_p2 = scmp.ge.s32.totalorder %s2158_s23, 1 }
  0x39   : > { %p468_p5 = pnand %p2643_p2, %p2642_p1 }
  0x3a   : > { %s2365_s15 = sand.u32 (!%p468_p5), 1, %s2142_s19  }
  0x3b   : > { %471 = sbr.rel (%p468_p5) target bundleno = 2592 (0xa20), region = 80  ;;  %s1758_s28 = sshll.u32 (!%p468_p5), %s2365_s15, 3 }
  0x3c   : > { %s474_s25 = scalar_lea.sflag (!%p468_p5), [#allocation3], %s2365_s15  ;;  %s477_s17 = scalar_lea.vmem (!%p468_p5), [#allocation2], %s1758_s28 }
  0x42   : > { %2129 = dma.done.wait (%p2301_p8), %s474_s25, 128  }
  0x43   : > { %2131 = vsyncadd (%p2301_p8), %s474_s25, 4294967168  ;;  %vm528_vm0 = vcmask 261120   ;;  %v2375_v0 = vld [vmem:[%s477_s17] sm:$0xff]  ;;  %v2161_v8 = vmov 0.0   ;;  %vm2162_vm1 = vmmov 0   ;;  %s2644_s1 = sld [smem:[#allocation14_spill]]  ;;  %v688_v41 = vlaneseq }
  0x44   : > { %v529_v1 = vsel %vm528_vm0, %v2375_v0, 0.0  ;;  %v2008_v7 = vld [vmem:[%s2609_s3] sm:$0xff]   ;;  %1842 = vmatprep.subr.bf16.mxu1 %v2161_v8  ;;  %1846 = vmatprep.mubr.msk.bf16.mxu1 %vm2162_vm1, %v2161_v8  ;;  %v2009_v9 = vld [vmem:[%s2609_s3 + $0x8] sm:$0xff]   ;;  %s2163_s24 = smov 120   ;;  %vm694_vm2 = vcmask 64512   ;;  %s2164_s22 = smov 112  }
  0x45   : > { %530 = vadd.xlane.f32.xlu0 %v529_v1  ;;  %1843 = vmatpush3.bf16.msra.mxu1 %v2008_v7  ;;  %v1761_v16 = vld [vmem:[%s2608_s2] ss:$0 sm:$0xff]  ;;  %v2011_v21 = vld [vmem:[%s2611_s5 + $0x8] sm:$0xff]   ;;  %s2165_s25 = smov 104   ;;  %v689_v42 = vshrl.u32 %v688_v41, 7  ;;  %v691_v43 = vand.u32 127, %v688_v41 }
  0x46   : > { %1868 = vmatprep.subr.mxu0 %v2161_v8  ;;  %1844 = vmatprep.subr.bf16.mxu1 %v2161_v8  ;;  %v2010_v19 = vld [vmem:[%s2611_s5] sm:$0xff]   ;;  %s2166_s17 = smov 88   ;;  %s2167_s21 = smov 96   ;;  %vm1366_vm4 = vcmask 130048   ;;  %vm1368_vm5 = vcmask 195584  }
  0x47   : > { %1870 = vmatprep.mubr.msk.f32.mxu0 %vm2162_vm1, %v2161_v8  ;;  %v1762_v22 = vld [vmem:[%s2610_s4] ss:$0 sm:$0xff]  ;;  %vm692_vm3 = vcmp.gt.s32.totalorder %v691_v43, %v689_v42  ;;  %s2168_s27 = smov 72   ;;  %s2169_s30 = smov 80  }
  0x48   : > { %v1766_v29 = vld [vmem:[%s2612_s6] ss:$0 sm:$0xff]  ;;  %v693_v44 = vsel %vm692_vm3, -100000.0, %v2161_v8  ;;  %s523_s14 = scalar_lea.vmem [#allocation5], %s1758_s28  ;;  %s1658_s28 = scalar_lea.sflag [#allocation4], %s2365_s15 }
  0x49   : > { %1845 = vmatpush3.bf16.msra.mxu1 %v2009_v9  ;;  %v1760_v14 = vld [vmem:[%s2644_s1] ss:$0 sm:$0xff]  ;;  %p2649_p9 = scmp.ne.s32.totalorder %s2637_s16, 0 }
  0x4a   : > { %1850 = vmatprep.subr.bf16.mxu1 %v2161_v8 }
  0xd2   : > { %v531_v2 = vpop.xlane.xlu0 %530 }
  0xd3   : > { %v533_v3 = vmul.f32 0.03125, %v531_v2 }
  0xd5   : > { %v534_v4 = vsub.f32 %v2375_v0, %v533_v3 }
  0xd7   : > { %v535_v5 = vmul.f32 %v534_v4, %v534_v4 }
  0xd9   : > { %v536_v6 = vsel %vm528_vm0, %v535_v5, 0.0 }
  0xda   : > { %537 = vadd.xlane.f32.xlu0 %v536_v6 }
 0x167   : > { %v538_v10 = vpop.xlane.xlu0 %537 }
 0x168   : > { %v539_v11 = vmul.f32 0.03125, %v538_v10 }
 0x16a   : > { %v540_v12 = vadd.f32 1e-05, %v539_v11 }
 0x16c   : > { %2024 = vrsqrt.f32 %v540_v12 }
 0x176   : > { %v2025_v13 = vpop.eup %2024 }
 0x177   : > { %v542_v15 = vmul.f32 %v2025_v13, %v534_v4 }
 0x179   : > { %v549_v17 = vmul.f32 %v1760_v14, %v542_v15 }
 0x17b   : > { %v556_v18 = vadd.f32 %v1761_v16, %v549_v17 }
 0x17d   : > { %v557_v20 = vpack.c.bf16 %v556_v18, %v556_v18 }
 0x17f   : > { %1847 = vmatmul.mubr.msk.bf16.vlgmr.msra.gmra.mrb[0].mxu1 %vm528_vm0, %v557_v20 }
 0x180   : > { %1851 = vmatpush3.bf16.msra.mxu1 %v2010_v19  ;;  %1854 = vmatprep.mubr.msk.bf16.mxu1 %vm2162_vm1, %v2161_v8 }
 0x181   : > { %1852 = vmatprep.subr.bf16.mxu1 %v2161_v8 }
 0x184   : > { %1853 = vmatpush3.bf16.msra.mxu1 %v2011_v21 }
 0x185   : > { %1858 = vmatprep.subr.mxu1 %v2161_v8 }
 0x187   : > { %1855 = vmatmul.mubr.msk.bf16.vlgmr.msra.gmra.mrb[4].mxu1 %vm528_vm0, %v557_v20 }
 0x188   : > { %1860 = vmatprep.mubr.msk.f32.mxu1 %vm2162_vm1, %v2161_v8 }
 0x252   : > { %v618_v23 = vpop.f32.mrb[0].mxu1 }
 0x253   : > { %v619_v24 = vadd.f32 %v1762_v22, %v618_v23  ;;  %v1848_v25 = vpop.f32.mrb[1].mxu1 }
 0x254   : > { %v621_v26 = vpop.f32.mrb[2].mxu1 }
 0x255   : > { %v624_v27 = vmul.f32 0.35355338, %v619_v24  ;;  %v1849_v28 = vpop.f32.mrb[3].mxu1 }
 0x257   : > { %858 = vrot.lane.b32.xlu1 %v624_v27, %s2163_s24 }
 0x25a   : > { %v682_v30 = vpop.f32.mrb[4].mxu1 }
 0x25b   : > { %v2421_v31 = vadd.f32 %v1766_v29, %v682_v30  ;;  %v1856_v32 = vpop.f32.mrb[5].mxu1 }
 0x25c   : > { %v685_v33 = vpop.f32.mrb[6].mxu1 }
 0x25d   : > { %1025 = vrot.lane.b32.xlu0 %v2421_v31, %s2164_s22  ;;  %860 = vrot.lane.b32.xlu1 %v2421_v31, %s2163_s24  ;;  %v1857_v34 = vpop.f32.mrb[7].mxu1  ;;  %s1672_s24 = sshll.u32 %s523_s14, 4  ;;  %s2558_s24 = int_to_ptr.vmem [resolvable:$true] %s1672_s24 }
 0x25e   : > { %1859 = vmatpush3.xpose.msk.msra.mxu1 %vm694_vm2, %v2421_v31 }
 0x25f   : > { %1863 = vmatprep.subr.mxu1 %v2161_v8 }
 0x261   : > { %1861 = vmatmul.mubr.msk.f32.vlgmr.msra.gmra.mrb[8].mxu1 %vm694_vm2, %v624_v27  ;;  %1023 = vrot.lane.b32.xlu1 %v624_v27, %s2164_s22  ;;  %s2170_s22 = smov 8  }
 0x262   : > { %1865 = vmatprep.mubr.msk.f32.mxu1 %vm2162_vm1, %v2161_v8 }
 0x265   : > { %1190 = vrot.lane.b32.xlu1 %v2421_v31, %s2165_s25 }
 0x269   : > { %1188 = vrot.lane.b32.xlu1 %v624_v27, %s2165_s25  ;;  %s2171_s25 = smov 16  }
 0x2c9   : > { %v859_v35 = vpop.permute.xlu1 %858 }
 0x2cf   : > { %v861_v36 = vpop.permute.xlu1 %860  ;;  %v1026_v37 = vpop.permute.xlu0 %1025 }
 0x2d0   : > { %1869 = vmatpush3.xpose.msk.msra.mxu0 %vm694_vm2, %v861_v36 }
 0x2d1   : > { %1878 = vmatprep.subr.mxu0 %v2161_v8 }
 0x2d3   : > { %1871 = vmatmul.mubr.msk.f32.vlgmr.msra.gmra.mrb[0].mxu0 %vm694_vm2, %v859_v35  ;;  %v1024_v38 = vpop.permute.xlu1 %1023 }
 0x2d4   : > { %1879 = vmatpush3.xpose.msk.msra.mxu0 %vm694_vm2, %v1026_v37  ;;  %1880 = vmatprep.mubr.msk.f32.mxu0 %vm2162_vm1, %v2161_v8  ;;  %v2012_v37 = vld [vmem:[%s2613_s7] sm:$0xff]  }
 0x2d5   : > { %1888 = vmatprep.subr.mxu0 %v2161_v8 }
 0x2d7   : > { %1881 = vmatmul.mubr.msk.f32.vlgmr.msra.gmra.mrb[2].mxu0 %vm694_vm2, %v1024_v38  ;;  %v1191_v39 = vpop.permute.xlu1 %1190  ;;  %v2013_v38 = vld [vmem:[%s2613_s7 + $0x8] sm:$0xff]  }
 0x2d8   : > { %1889 = vmatpush3.xpose.msk.msra.mxu0 %vm694_vm2, %v1191_v39  ;;  %1890 = vmatprep.mubr.msk.f32.mxu0 %vm2162_vm1, %v2161_v8 }
 0x2d9   : > { %1898 = vmatprep.subr.bf16.mxu0 %v2161_v8 }
 0x2db   : > { %v1189_v40 = vpop.permute.xlu1 %1188 }
 0x2dc   : > { %1891 = vmatmul.mubr.msk.f32.vlgmr.msra.gmra.mrb[4].mxu0 %vm694_vm2, %v1189_v40 }
 0x2dd   : > { %1902 = vmatprep.mubr.msk.bf16.mxu0 %vm2162_vm1, %v2161_v8  ;;  %1899 = vmatpush3.bf16.msra.mxu0 %v2012_v37 }
 0x2de   : > { %1900 = vmatprep.subr.bf16.mxu0 %v2161_v8 }
 0x2e1   : > { %1901 = vmatpush3.bf16.msra.mxu0 %v2013_v38 }
 0x2e2   : > { %1914 = vmatprep.subr.bf16.mxu0 %v2161_v8 }
 0x334   : > { %v767_v45 = vpop.f32.mrb[8].mxu1 }
 0x335   : > { %v768_v46 = vadd.f32 %v767_v45, %v693_v44  ;;  %v1862_v47 = vpop.f32.mrb[9].mxu1 }
 0x337   : > { %v771_v48 = vsel %vm694_vm2, %v768_v46, -inf }
 0x338   : > { %772 = vmax.xlane.f32.xlu1 %v771_v48 }
 0x3a6   : > { %v932_v49 = vpop.f32.mrb[0].mxu0 }
 0x3a7   : > { %v933_v50 = vadd.f32 %v932_v49, %v693_v44  ;;  %v1872_v51 = vpop.f32.mrb[1].mxu0 }
 0x3a9   : > { %v936_v52 = vsel %vm694_vm2, %v933_v50, -inf }
 0x3aa   : > { %937 = vmax.xlane.f32.xlu0 %v936_v52  ;;  %v1097_v53 = vpop.f32.mrb[2].mxu0  ;;  %v1782_v52 = vld [vmem:[%s2614_s8] ss:$0 sm:$0xff] }
 0x3ab   : > { %v1098_v54 = vadd.f32 %v1097_v53, %v693_v44  ;;  %v1882_v55 = vpop.f32.mrb[3].mxu0 }
 0x3ad   : > { %v1101_v56 = vsel %vm694_vm2, %v1098_v54, -inf }
 0x3ae   : > { %1102 = vmax.xlane.f32.xlu1 %v1101_v56 }
 0x3af   : > { %v1262_v57 = vpop.f32.mrb[4].mxu0 }
 0x3b0   : > { %v1263_v58 = vadd.f32 %v1262_v57, %v693_v44  ;;  %v1892_v59 = vpop.f32.mrb[5].mxu0 }
 0x3b2   : > { %v1266_v60 = vsel %vm694_vm2, %v1263_v58, -inf }
 0x3b3   : > { %1267 = vmax.xlane.f32.xlu1 %v1266_v60 }
 0x3c4   : > { %947 = vrot.lane.b32.xlu1 %v2421_v31, %s2166_s17  ;;  %s2172_s17 = smov 24  }
 0x3c5   : > { %v773_v61 = vpop.xlane.xlu1 %772 }
 0x3c6   : > { %v774_v62 = vsub.f32 %v768_v46, %v773_v61 }
 0x3c8   : > { %v775_v63 = vmul.f32 1.442695, %v774_v62 }
 0x3ca   : > { %2026 = vpow2.f32 %v775_v63 }
 0x3d4   : > { %v2027_v1 = vpop.eup %2026 }
 0x3d5   : > { %v777_v2 = vsel %vm694_vm2, %v2027_v1, 0.0 }
 0x3d6   : > { %778 = vadd.xlane.f32.xlu0 %v777_v2  ;;  %v2014_v2 = vld [vmem:[%s2617_s11] sm:$0xff]  }
 0x3ec   : > { %782 = vrot.lane.b32.xlu0 %v2421_v31, %s2167_s21 }
 0x437   : > { %v938_v3 = vpop.xlane.xlu0 %937 }
 0x438   : > { %v939_v4 = vsub.f32 %v933_v50, %v938_v3  ;;  %v2016_v3 = vld [vmem:[%s2619_s13] sm:$0xff]  }
 0x43a   : > { %v940_v5 = vmul.f32 1.442695, %v939_v4 }
 0x43b   : > { %v1103_v6 = vpop.xlane.xlu1 %1102 }
 0x43c   : > { %2028 = vpow2.f32 %v940_v5  ;;  %v1104_v7 = vsub.f32 %v1098_v54, %v1103_v6 }
 0x43e   : > { %v1105_v9 = vmul.f32 1.442695, %v1104_v7 }
 0x440   : > { %2030 = vpow2.f32 %v1105_v9  ;;  %v1268_v10 = vpop.xlane.xlu1 %1267  ;;  %v1786_v9 = vld [vmem:[%s2615_s9] ss:$0 sm:$0xff] }
 0x441   : > { %v1269_v11 = vsub.f32 %v1263_v58, %v1268_v10 }
 0x443   : > { %v1270_v12 = vmul.f32 1.442695, %v1269_v11  ;;  %v1787_v11 = vld [vmem:[%s2616_s10] ss:$0 sm:$0xff] }
 0x444   : > { %v948_v23 = vpop.permute.xlu1 %947 }
 0x445   : > { %2032 = vpow2.f32 %v1270_v12 }
 0x446   : > { %v2029_v13 = vpop.eup %2028 }
 0x447   : > { %v942_v14 = vsel %vm694_vm2, %v2029_v13, 0.0 }
 0x448   : > { %943 = vadd.xlane.f32.xlu1 %v942_v14 }
 0x44a   : > { %v2031_v15 = vpop.eup %2030 }
 0x44b   : > { %v1107_v16 = vsel %vm694_vm2, %v2031_v15, 0.0 }
 0x44c   : > { %1108 = vadd.xlane.f32.xlu0 %v1107_v16  ;;  %v2018_v16 = vld [vmem:[%s2619_s13 + $0x10] sm:$0xff]  }
 0x44f   : > { %v2033_v17 = vpop.eup %2032 }
 0x450   : > { %v1272_v18 = vsel %vm694_vm2, %v2033_v17, 0.0 }
 0x451   : > { %1273 = vadd.xlane.f32.xlu1 %v1272_v18  ;;  %v2020_v18 = vld [vmem:[%s2619_s13 + $0x20] sm:$0xff]  }
 0x462   : > { %1277 = vrot.lane.b32.xlu0 %v2421_v31, %s2168_s27  ;;  %1112 = vrot.lane.b32.xlu1 %v2421_v31, %s2169_s30  ;;  %s2646_s27 = sld [smem:[#allocation15_spill]] }
 0x463   : > { %v779_v19 = vpop.xlane.xlu0 %778 }
 0x464   : > { %2034 = vrcp.f32 %v779_v19  ;;  %v2021_v19 = vld [vmem:[%s2619_s13 + $0x28] sm:$0xff]  }
 0x467   : > { %v783_v20 = vpop.permute.xlu0 %782 }
 0x468   : > { %1864 = vmatpush3.msra.mxu1 %v783_v20  ;;  %v2022_v20 = vld [vmem:[%s2619_s13 + $0x30] sm:$0xff]   ;;  %v1792_v37 = vld [vmem:[%s2646_s27] ss:$0 sm:$0xff] }
 0x469   : > { %1873 = vmatprep.subr.mxu1 %v2161_v8 }
 0x46e   : > { %v2035_v21 = vpop.eup %2034 }
 0x46f   : > { %v781_v22 = vmul.f32 %v2035_v21, %v2027_v1  ;;  %v2023_v21 = vld [vmem:[%s2619_s13 + $0x38] sm:$0xff]  }
 0x471   : > { %1866 = vmatmul.mubr.msk.f32.vlgmr.msra.gmra.mrb[10].mxu1 %vm694_vm2, %v781_v22  ;;  %v1788_v22 = vld [vmem:[%s2618_s12] ss:$0 sm:$0xff] }
 0x472   : > { %1874 = vmatpush3.msra.mxu1 %v948_v23  ;;  %1875 = vmatprep.mubr.msk.f32.mxu1 %vm2162_vm1, %v2161_v8 }
 0x473   : > { %1883 = vmatprep.subr.mxu1 %v2161_v8 }
 0x4d5   : > { %v944_v24 = vpop.xlane.xlu1 %943 }
 0x4d6   : > { %2036 = vrcp.f32 %v944_v24 }
 0x4d9   : > { %v1109_v25 = vpop.xlane.xlu0 %1108 }
 0x4da   : > { %2038 = vrcp.f32 %v1109_v25 }
 0x4dd   : > { %v1278_v32 = vpop.permute.xlu0 %1277 }
 0x4de   : > { %v1274_v26 = vpop.xlane.xlu1 %1273 }
 0x4df   : > { %2040 = vrcp.f32 %v1274_v26 }
 0x4e0   : > { %v2037_v27 = vpop.eup %2036 }
 0x4e1   : > { %v946_v28 = vmul.f32 %v2037_v27, %v2029_v13 }
 0x4e2   : > { %v1113_v29 = vpop.permute.xlu1 %1112 }
 0x4e3   : > { %1876 = vmatmul.mubr.msk.f32.vlgmr.msra.gmra.mrb[12].mxu1 %vm694_vm2, %v946_v28 }
 0x4e4   : > { %v2039_v30 = vpop.eup %2038  ;;  %1884 = vmatpush3.msra.mxu1 %v1113_v29  ;;  %1885 = vmatprep.mubr.msk.f32.mxu1 %vm2162_vm1, %v2161_v8 }
 0x4e5   : > { %v1111_v31 = vmul.f32 %v2039_v30, %v2031_v15  ;;  %1893 = vmatprep.subr.mxu1 %v2161_v8  ;;  %v2017_v15 = vld [vmem:[%s2619_s13 + $0x8] sm:$0xff]  }
 0x4e7   : > { %1886 = vmatmul.mubr.msk.f32.vlgmr.msra.gmra.mrb[14].mxu1 %vm694_vm2, %v1111_v31 }
 0x4e8   : > { %1894 = vmatpush3.msra.mxu1 %v1278_v32  ;;  %1895 = vmatprep.mubr.msk.f32.mxu1 %vm2162_vm1, %v2161_v8 }
 0x4e9   : > { %v2041_v33 = vpop.eup %2040  ;;  %1906 = vmatprep.subr.bf16.mxu1 %v2161_v8 }
 0x4ea   : > { %v1276_v34 = vmul.f32 %v2041_v33, %v2033_v17  ;;  %v2019_v17 = vld [vmem:[%s2619_s13 + $0x18] sm:$0xff]  }
 0x4ec   : > { %1896 = vmatmul.mubr.msk.f32.vlgmr.msra.gmra.mrb[16].mxu1 %vm694_vm2, %v1276_v34 }
 0x4ed   : > { %1910 = vmatprep.mubr.msk.bf16.mxu1 %vm2162_vm1, %v2161_v8  ;;  %1907 = vmatpush3.bf16.msra.mxu1 %v2014_v2 }
 0x4ee   : > { %1908 = vmatprep.subr.bf16.mxu1 %v2161_v8 }
 0x544   : > { %v854_v35 = vpop.f32.mrb[10].mxu1 }
 0x545   : > { %v1867_v36 = vpop.f32.mrb[11].mxu1 }
 0x5b6   : > { %v1019_v39 = vpop.f32.mrb[12].mxu1 }
 0x5b7   : > { %1354 = vrot.lane.b32.xlu1 %v1019_v39, %s2170_s22  ;;  %v1877_v40 = vpop.f32.mrb[13].mxu1  ;;  %s2647_s22 = sld [smem:[#allocation16_spill]] }
 0x5ba   : > { %v1184_v41 = vpop.f32.mrb[14].mxu1 }
 0x5bb   : > { %1358 = vrot.lane.b32.xlu0 %v1184_v41, %s2171_s25  ;;  %v1887_v42 = vpop.f32.mrb[15].mxu1  ;;  %s2645_s25 = sld [smem:[#allocation9_spill]] }
 0x5bd   : > { %s2648_s0 = smov %s2647_s22 }
 0x5bf   : > { %v1349_v43 = vpop.f32.mrb[16].mxu1 }
 0x5c0   : > { %1362 = vrot.lane.b32.xlu1 %v1349_v43, %s2172_s17  ;;  %v1897_v44 = vpop.f32.mrb[17].mxu1  ;;  %s2173_s17 = smov [#allocation5]  }
 0x5c1   : > { %s1802_s30 = sshll.u32 %s2645_s25, 7  ;;  %s2076_s25 = scalar_lea.vmem %s2558_s24, 128 }
 0x5c2   : > { %s2556_s1 = scalar_lea.hbm %s2647_s22, %s1802_s30  ;;  %p2077_p8 = scmp.ne.s32.totalorder %s2558_s24, %s2076_s25 }
 0x5c3   : > { %s2080_s21 = sshll.u32 %s2173_s17, 4  ;;  %s2081_s21 = int_to_ptr.vmem [resolvable:$false] %s2080_s21 }
 0x5c4   : > { %p2078_p11 = pnand %p2077_p8, %p2649_p9  ;;  %s2082_s27 = scalar_lea.vmem %s2081_s21, 256 }
 0x5c5   : > { %p2083_p7 = scmp.lt.s32.totalorder %s2558_s24, %s2081_s21  ;;  %p2084_p13 = scmp.lt.s32.totalorder %s2082_s27, %s2076_s25 }
 0x5c6   : > { %p2079_p0 = pneg %p2078_p11 }
 0x5c7   : > { %p2085_p3 = por %p2084_p13, %p2083_p7 }
 0x5c9   : > { %p2086_p6 = pnand %p2085_p3, %p2079_p0 }
 0x629   : > { %v1355_v45 = vpop.permute.xlu1 %1354 }
 0x62a   : > { %v1365_v47 = vsel %vm694_vm2, %v854_v35, %v1355_v45 }
 0x62d   : > { %v1359_v46 = vpop.permute.xlu0 %1358 }
 0x62e   : > { %v1367_v48 = vsel %vm1366_vm4, %v1365_v47, %v1359_v46 }
 0x632   : > { %v1363_v49 = vpop.permute.xlu1 %1362 }
 0x633   : > { %v1369_v50 = vsel %vm1368_vm5, %v1367_v48, %v1363_v49 }
 0x634   : > { %v1370_v51 = vpack.c.bf16 %v1369_v50, %v1369_v50 }
 0x636   : > { %1903 = vmatmul.mubr.msk.bf16.vlgmr.msra.gmra.mrb[8].mxu0 %vm528_vm0, %v1370_v51 }
 0x637   : > { %1930 = vmatprep.mubr.msk.bf16.mxu0 %vm2162_vm1, %v2161_v8  ;;  %1915 = vmatpush3.bf16.msra.mxu0 %v2016_v3 }
 0x638   : > { %1916 = vmatprep.subr.bf16.mxu0 %v2161_v8 }
 0x63b   : > { %1917 = vmatpush3.bf16.msra.mxu0 %v2017_v15 }
 0x63c   : > { %1918 = vmatprep.subr.bf16.mxu0 %v2161_v8 }
 0x63f   : > { %1919 = vmatpush3.bf16.msra.mxu0 %v2018_v16 }
 0x640   : > { %1920 = vmatprep.subr.bf16.mxu0 %v2161_v8 }
 0x643   : > { %1921 = vmatpush3.bf16.msra.mxu0 %v2019_v17 }
 0x644   : > { %1922 = vmatprep.subr.bf16.mxu0 %v2161_v8 }
 0x647   : > { %1923 = vmatpush3.bf16.msra.mxu0 %v2020_v18 }
 0x648   : > { %1924 = vmatprep.subr.bf16.mxu0 %v2161_v8 }
 0x64b   : > { %1925 = vmatpush3.bf16.msra.mxu0 %v2021_v19 }
 0x64c   : > { %1926 = vmatprep.subr.bf16.mxu0 %v2161_v8 }
 0x64f   : > { %1927 = vmatpush3.bf16.msra.mxu0 %v2022_v20 }
 0x650   : > { %1928 = vmatprep.subr.bf16.mxu0 %v2161_v8 }
 0x653   : > { %1929 = vmatpush3.bf16.msra.mxu0 %v2023_v21 }
 0x709   : > { %v1431_v53 = vpop.f32.mrb[8].mxu0 }
 0x70a   : > { %v1432_v54 = vadd.f32 %v1782_v52, %v1431_v53  ;;  %v1904_v55 = vpop.f32.mrb[9].mxu0 }
 0x70b   : > { %v1434_v56 = vpop.f32.mrb[10].mxu0 }
 0x70c   : > { %v2492_v57 = vadd.f32 %v1432_v54, %v2375_v0  ;;  %v1905_v58 = vpop.f32.mrb[11].mxu0  ;;  %v2015_v0 = vld [vmem:[%s2617_s11 + $0x8] sm:$0xff]  }
 0x70d   : > { %1909 = vmatpush3.bf16.msra.mxu1 %v2015_v0 }
 0x70e   : > { %v1440_v59 = vsel %vm528_vm0, %v2492_v57, 0.0 }
 0x70f   : > { %1441 = vadd.xlane.f32.xlu0 %v1440_v59 }
 0x79c   : > { %v1442_v60 = vpop.xlane.xlu0 %1441 }
 0x79d   : > { %v1443_v61 = vmul.f32 0.03125, %v1442_v60 }
 0x79f   : > { %v1444_v62 = vsub.f32 %v2492_v57, %v1443_v61 }
 0x7a1   : > { %v1445_v63 = vmul.f32 %v1444_v62, %v1444_v62 }
 0x7a3   : > { %v1446_v1 = vsel %vm528_vm0, %v1445_v63, 0.0 }
 0x7a4   : > { %1447 = vadd.xlane.f32.xlu1 %v1446_v1 }
 0x831   : > { %v1448_v4 = vpop.xlane.xlu1 %1447 }
 0x832   : > { %v1449_v5 = vmul.f32 0.03125, %v1448_v4 }
 0x834   : > { %v1450_v6 = vadd.f32 1e-05, %v1449_v5 }
 0x836   : > { %2042 = vrsqrt.f32 %v1450_v6 }
 0x840   : > { %v2043_v7 = vpop.eup %2042 }
 0x841   : > { %v1452_v10 = vmul.f32 %v2043_v7, %v1444_v62 }
 0x843   : > { %v1459_v12 = vmul.f32 %v1786_v9, %v1452_v10 }
 0x845   : > { %v1466_v13 = vadd.f32 %v1787_v11, %v1459_v12 }
 0x847   : > { %v1467_v14 = vpack.c.bf16 %v1466_v13, %v1466_v13 }
 0x849   : > { %1911 = vmatmul.mubr.msk.bf16.vlgmr.msra.gmra.mrb[20].mxu1 %vm528_vm0, %v1467_v14 }
 0x91c   : > { %v1528_v23 = vpop.f32.mrb[20].mxu1 }
 0x91d   : > { %v1529_v24 = vadd.f32 %v1788_v22, %v1528_v23  ;;  %v1912_v25 = vpop.f32.mrb[21].mxu1 }
 0x91e   : > { %v1531_v26 = vpop.f32.mrb[22].mxu1 }
 0x91f   : > { %v1535_v27 = vmul.f32 0.044715, %v1529_v24  ;;  %v1913_v28 = vpop.f32.mrb[23].mxu1  ;;  %v1534_v8 = vmul.f32 0.5, %v1529_v24 }
 0x921   : > { %v1536_v29 = vmul.f32 %v1535_v27, %v1529_v24 }
 0x923   : > { %v1537_v30 = vmul.f32 %v1536_v29, %v1529_v24 }
 0x925   : > { %v1538_v31 = vadd.f32 %v1537_v30, %v1529_v24 }
 0x927   : > { %v1539_v32 = vmul.f32 0.7978845, %v1538_v31 }
 0x929   : > { %2044 = vtanh.f32 %v1539_v32 }
 0x933   : > { %v2045_v33 = vpop.eup %2044 }
 0x934   : > { %v1541_v34 = vadd.f32 1.0, %v2045_v33 }
 0x936   : > { %v1542_v35 = vmul.f32 %v1541_v34, %v1534_v8 }
 0x938   : > { %v1543_v36 = vpack.c.bf16 %v1542_v35, %v1542_v35 }
 0x93a   : > { %1931 = vmatmul.mubr.bf16.vlgmr.msra.gmra.mrb[12].mxu0 %v1543_v36 }
 0xa0d   : > { %v1649_v38 = vpop.f32.mrb[12].mxu0 }
 0xa0e   : > { %v1650_v39 = vadd.f32 %v1792_v37, %v1649_v38  ;;  %v1932_v40 = vpop.f32.mrb[13].mxu0 }
 0xa0f   : > { %v1652_v41 = vpop.f32.mrb[14].mxu0 }
 0xa10   : > { %v1655_v42 = vadd.f32 %v1650_v39, %v2492_v57  ;;  %v1933_v43 = vpop.f32.mrb[15].mxu0 }
 0xa12   : > { %1656 = vst.msk [vmem:[%s523_s14] sm:$0xff] %vm528_vm0, %v1655_v42 }
 0xa13   : > { %2089 = shalt.err (!%p2086_p6)
}
 0xa14   : > { %s2090_s15 = scalar_lea.hbm %s2556_s1, 128  ;;  %s2094_s26 = scalar_lea.hbm %s2648_s0, 256 }
 0xa15   : > { %p2091_p4 = scmp.ne.s32.totalorder %s2556_s1, %s2090_s15  ;;  %p2095_p1 = scmp.lt.u32.totalorder %s2556_s1, %s2648_s0 }
 0xa16   : > { %p2096_p2 = scmp.lt.u32.totalorder %s2094_s26, %s2090_s15  ;;  %p2098_p8 = scmp.lt.u32.totalorder %s2090_s15, %s2556_s1 }
 0xa17   : > { %p2092_p10 = pnand %p2091_p4, %p2649_p9 }
 0xa18   : > { %p2097_p5 = por %p2096_p2, %p2095_p1 }
 0xa19   : > { %p2093_p12 = pneg %p2092_p10 }
 0xa1a   : > { %p2099_p11 = por %p2098_p8, %p2097_p5 }
 0xa1c   : > { %p2100_p0 = pnand %p2099_p11, %p2093_p12 }
 0xa1e   : > { %2103 = shalt.err (!%p2100_p0)
}
 0xa1f   : > { %1936 = dma.vmem_to_hbm [thread:$0]  (%p2649_p9), %s2558_s24, 128, %s2556_s1, %s1658_s28  }
 0xa20 PF: > { %s2650_s25 = sld [smem:[#allocation8_spill]]  ;;  %p2651_p7 = scmp.ne.s32.totalorder %s2639_s18, 0 }
 0xa21   : > { %p2652_p13 = scmp.ge.s32.totalorder %s2158_s23, 2 }
 0xa23   : > { %p1943_p3 = pnand %p2652_p13, %p2651_p7 }
 0xa26   : > { %s1684_s17 = sand.u32 1, %s2650_s25  }
 0xa27   : > { %s1685_s21 = scalar_lea.sflag [#allocation4], %s1684_s17 }
 0xa28   : > { %2133 = dma.done.wait (!%p1943_p3), %s1685_s21, 128  }
 0xa29   : > { %2135 = vsyncadd (!%p1943_p3), %s1685_s21, 4294967168  ;;  %s31_s23 = sadd.s32 1, %s2158_s23   ;;  %s2653_s16 = sld [smem:[#allocation12_spill]] }
 0xa2a   : > { %p28_p6 = scmp.ge.s32.totalorder %s31_s23, 4   ;;  %s2654_s21 = sld [smem:[#allocation10_spill]] }
 0xa2b   : > { %s2655_s22 = sld [smem:[#allocation11_spill]]  ;;  %s2656_s18 = smov %s2142_s19 }
 0xa2c   : > { %s2657_s19 = smov %s2146_s20  ;;  %30 = sbr.rel (!%p28_p6) target bundleno = 11 (0xb), region = 125 }
 0xa2f   : > { %s2658_s20 = smov %s2653_s16 }
 0xa33   :  { %1690 = vsyncpa [#allocation3], 1 }
 0xa34   :  { %1692 = vsyncpa [#allocation3 + $0x1], 1 }
 0xa35   :  { %1693 = vsyncpa [#allocation4], 1 }
 0xa36   :  { %1695 = vsyncpa [#allocation4 + $0x1], 1 }

</bundles_post_ra>
